<compile_context>
chip_gen: v7x
topology: tpu7x:2x2x1
jax: 0.10.0
libtpu: 0.0.40
codegen_flags: <defaults>
</compile_context>

<pallas_src>
import jax
import jax.numpy as jnp
from jax import lax
from jax.experimental import pallas as pl
from jax.experimental.pallas import tpu as pltpu

PAD = 128                       # padded hidden width (all hidden dims <= 128)
HIDDEN = [32, 64, 128, 64, 32, 16, 1]
NUM_LAYERS = len(HIDDEN)
LANE = 128
TB_MAX = 2048                   # max batch tile (lane axis); VMEM stays at a few MiB


def _round_up(x, m):
    return ((x + m - 1) // m) * m


def _cdiv(a, b):
    return -(-a // b)


def _choose_tiling(B):
    """Pick (TB, B_pad, grid) for a batch of B rows.

    - tiny batches (<=128): single tile of round_up(B, 8) lanes (block == full array dim).
    - larger batches: tiles are multiples of 128 lanes capped at TB_MAX; once there are
      >= 4 chunks of 128 we force >= 2 tiles so the "parallel" axis can shard across v7x's
      two TensorCores.  Padding waste is bounded by one 128-chunk per tile (not by TB).
    """
    if B <= LANE:
        tb = _round_up(B, 8)
        return tb, tb, 1
    n = _cdiv(B, LANE)                     # 128-lane chunks of real work
    g = _cdiv(n, TB_MAX // LANE)           # enough tiles to keep TB <= TB_MAX
    if n >= 4:
        g = max(g, 2)                      # v7x megacore: >= 2 parallel grid steps
    chunks = _cdiv(n, g)
    tb = chunks * LANE
    return tb, g * tb, g


def _mlp_kernel(x_ref, wf_ref, wm_ref, wl_ref, b_ref, o_ref):
    """Fused MLP forward.

    x_ref:  (TB, F)        f32/bf16  input tile in natural (batch, feature) layout
    wf_ref: (128, F)       bf16      W0^T zero-padded on the output rows
    wm_ref: (5, 128, 128)  bf16      W1..W5^T zero-padded
    wl_ref: (8, 128)       bf16      W6^T in row 0, rows 1-7 zero
    b_ref:  (7, 128, 1)    f32       biases as columns (broadcast over lanes/batch)
    o_ref:  (1, TB)        f32       sigmoid(logit) per batch element
    """
    # Layer 0: contract the F axis of both operands -> (128, TB), f32 MXU accumulation.
    h = lax.dot_general(
        wf_ref[...], x_ref[...].astype(jnp.bfloat16),
        dimension_numbers=(((1,), (1,)), ((), ())),
        preferred_element_type=jnp.float32)
    h = h + b_ref[0]                       # (128,1) broadcasts across lanes (batch)
    h = jnp.maximum(h, 0.2 * h)            # LeakyReLU(0.2): mul + max on the VPU

    # Layers 1..5: (128,128) @ (128,TB); bf16 MXU inputs, f32 accumulation.
    for li in range(5):
        h = jnp.dot(wm_ref[li], h.astype(jnp.bfloat16),
                    preferred_element_type=jnp.float32)
        h = h + b_ref[li + 1]
        h = jnp.maximum(h, 0.2 * h)

    # Layer 6: (8,128) @ (128,TB) -> (8,TB); only row 0 is the real logit.
    z = jnp.dot(wl_ref[...], h.astype(jnp.bfloat16),
                preferred_element_type=jnp.float32)
    z = z[0:1, :] + b_ref[6][0:1, :]
    # Sigmoid: EUP exp + approx reciprocal; lane-dense (1, TB) store.
    o_ref[...] = pl.reciprocal(1.0 + jnp.exp(-z), approx=True)


def build_discriminator_params(vector_shape, key):
    """Deterministic init matching nn.Linear default U(-1/sqrt(fan_in), 1/sqrt(fan_in))."""
    dims = [vector_shape] + HIDDEN
    ws, bs = [], []
    for li in range(NUM_LAYERS):
        fan_in, fan_out = dims[li], dims[li + 1]
        key, kw, kb = jax.random.split(key, 3)
        bound = 1.0 / jnp.sqrt(jnp.float32(fan_in))
        ws.append(jax.random.uniform(kw, (fan_in, fan_out), jnp.float32, -bound, bound))
        bs.append(jax.random.uniform(kb, (fan_out,), jnp.float32, -bound, bound))
    return ws, bs


def pack_params(ws, bs):
    """Transpose, zero-pad and stack parameters for the kernel (weights in bf16)."""
    F = ws[0].shape[0]
    # First layer: W0^T (32,F) -> (128,F)
    w_first = (jnp.zeros((PAD, F), jnp.float32)
               .at[:ws[0].shape[1], :].set(ws[0].T)).astype(jnp.bfloat16)
    # Middle layers 1..5: W^T padded to (128,128), stacked -> (5,128,128)
    w_mid = jnp.zeros((5, PAD, PAD), jnp.float32)
    for li in range(1, 6):
        w = ws[li]
        w_mid = w_mid.at[li - 1, :w.shape[1], :w.shape[0]].set(w.T)
    w_mid = w_mid.astype(jnp.bfloat16)
    # Last layer: W6^T (1, 16) in row 0 of an (8,128) slab.
    w_last = (jnp.zeros((8, PAD), jnp.float32)
              .at[:1, :ws[6].shape[0]].set(ws[6].T)).astype(jnp.bfloat16)
    # Biases as columns, stacked -> (7,128,1), kept f32.
    b_stack = jnp.zeros((NUM_LAYERS, PAD, 1), jnp.float32)
    for li in range(NUM_LAYERS):
        b_stack = b_stack.at[li, :bs[li].shape[0], 0].set(bs[li])
    return w_first, w_mid, w_last, b_stack


@jax.jit
def discriminator_forward(x, w_first, w_mid, w_last, b_stack):
    """x: (B, vector_shape) f32 (or bf16) -> (B, 1) f32, matching the PyTorch forward."""
    B, F = x.shape
    TB, B_pad, grid_b = _choose_tiling(B)
    # Only zero-row pad when the batch is not tile-aligned (no transpose, no pad otherwise).
    x_p = x if B_pad == B else jnp.pad(x, ((0, B_pad - B), (0, 0)))

    out = pl.pallas_call(
        _mlp_kernel,
        out_shape=jax.ShapeDtypeStruct((1, B_pad), jnp.float32),
        grid_spec=pltpu.PrefetchScalarGridSpec(
            num_scalar_prefetch=0,
            grid=(grid_b,),
            in_specs=[
                pl.BlockSpec((TB, F), lambda i: (i, 0)),
                # Grid-invariant parameter blocks (constant index maps): Pallas DMAs them
                # once and skips the per-step re-fetch.
                pl.BlockSpec((PAD, F), lambda i: (0, 0)),
                pl.BlockSpec((5, PAD, PAD), lambda i: (0, 0, 0)),
                pl.BlockSpec((8, PAD), lambda i: (0, 0)),
                pl.BlockSpec((NUM_LAYERS, PAD, 1), lambda i: (0, 0, 0)),
            ],
            out_specs=pl.BlockSpec((1, TB), lambda i: (0, i)),
        ),
        compiler_params=pltpu.CompilerParams(
            dimension_semantics=("parallel",)),
    )(x_p, w_first, w_mid, w_last, b_stack)

    return out[0, :B].reshape(B, 1)


def _reference_forward(x, ws, bs):
    h = x
    for li, (w, b) in enumerate(zip(ws, bs)):
        h = h @ w + b
        if li < NUM_LAYERS - 1:
            h = jnp.where(h > 0, h, 0.2 * h)
    return jax.nn.sigmoid(h)


if __name__ == "__main__":
    vector_shape = 16

    key = jax.random.PRNGKey(0)
    key, kp = jax.random.split(key)
    ws, bs = build_discriminator_params(vector_shape, kp)
    w_first, w_mid, w_last, b_stack = pack_params(ws, bs)

    # Small batch: single tile, lane dim == full array dim.
    key, kx = jax.random.split(key)
    x_small = jax.random.normal(kx, (8, vector_shape), jnp.float32)
    out_small = jax.block_until_ready(
        discriminator_forward(x_small, w_first, w_mid, w_last, b_stack))
    ref_small = _reference_forward(x_small, ws, bs)
    assert out_small.shape == (8, 1), out_small.shape
    # bf16 MXU inputs + approx reciprocal -> compare against the f32 reference loosely.
    assert jnp.max(jnp.abs(out_small - ref_small)) < 2e-2

    # Unaligned larger batch: exercises zero-row padding and the 2-step parallel grid.
    key, kx2 = jax.random.split(key)
    x_big = jax.random.normal(kx2, (520, vector_shape), jnp.float32)
    out_big = jax.block_until_ready(
        discriminator_forward(x_big, w_first, w_mid, w_last, b_stack))
    ref_big = _reference_forward(x_big, ws, bs)
    assert out_big.shape == (520, 1), out_big.shape
    assert jnp.max(jnp.abs(out_big - ref_big)) < 2e-2

    print("KERNEL_OK")
</pallas_src>

<mosaic_0001>
module attributes {stable_mosaic.version = 11 : i64} {
  func.func @_mlp_kernel(%arg0: i32, %arg1: memref<8x16xf32, #tpu.memory_space<vmem>>, %arg2: memref<128x16xbf16, #tpu.memory_space<vmem>>, %arg3: memref<5x128x128xbf16, #tpu.memory_space<vmem>>, %arg4: memref<8x128xbf16, #tpu.memory_space<vmem>>, %arg5: memref<7x128x1xf32, #tpu.memory_space<vmem>>, %arg6: memref<1x8xf32, #tpu.memory_space<vmem>>) attributes {dimension_semantics = [#tpu.dimension_semantics<parallel>], iteration_bounds = array<i64: 1>, scalar_prefetch = 0 : i64, scratch_operands = 0 : i64, tpu.core_type = #tpu.core_type<tc>, window_params = [{transform_indices = @transform_0, window_bounds = array<i64: 8, 16>}, {pipeline_mode = #tpu.pipeline_mode<synchronous>, transform_indices = @transform_1, window_bounds = array<i64: 128, 16>}, {pipeline_mode = #tpu.pipeline_mode<synchronous>, transform_indices = @transform_2, window_bounds = array<i64: 5, 128, 128>}, {pipeline_mode = #tpu.pipeline_mode<synchronous>, transform_indices = @transform_3, window_bounds = array<i64: 8, 128>}, {pipeline_mode = #tpu.pipeline_mode<synchronous>, transform_indices = @transform_4, window_bounds = array<i64: 7, 128, 1>}, {transform_indices = @transform_5, window_bounds = array<i64: 1, 8>}]} {
    %c0 = arith.constant 0 : index
    %c0_0 = arith.constant 0 : index
    %0 = vector.load %arg2[%c0, %c0_0] : memref<128x16xbf16, #tpu.memory_space<vmem>>, vector<128x16xbf16>
    %c0_1 = arith.constant 0 : index
    %c0_2 = arith.constant 0 : index
    %1 = vector.load %arg1[%c0_1, %c0_2] : memref<8x16xf32, #tpu.memory_space<vmem>>, vector<8x16xf32>
    %2 = arith.truncf %1 : vector<8x16xf32> to vector<8x16xbf16>
    %cst = arith.constant dense<0.000000e+00> : vector<128x8xf32>
    %3 = tpu.matmul %0, %2, %cst {dimension_numbers = #tpu.dot_dimension_numbers<[1], [1], [0], [0], [0, 0, 1, 0], [], []>} : vector<128x16xbf16>, vector<8x16xbf16>, vector<128x8xf32> -> vector<128x8xf32>
    %c0_3 = arith.constant 0 : index
    %c0_4 = arith.constant 0 : index
    %c0_5 = arith.constant 0 : index
    %4 = vector.load %arg5[%c0_3, %c0_4, %c0_5] : memref<7x128x1xf32, #tpu.memory_space<vmem>>, vector<1x128x1xf32>
    %5 = vector.shape_cast %4 : vector<1x128x1xf32> to vector<128x1xf32>
    %6 = vector.broadcast %5 : vector<128x1xf32> to vector<128x8xf32>
    %7 = arith.addf %3, %6 : vector<128x8xf32>
    %cst_6 = arith.constant 2.000000e-01 : f32
    %8 = vector.broadcast %cst_6 : f32 to vector<128x8xf32>
    %9 = arith.mulf %8, %7 : vector<128x8xf32>
    %10 = arith.maximumf %7, %9 : vector<128x8xf32>
    %c0_7 = arith.constant 0 : index
    %c0_8 = arith.constant 0 : index
    %c0_9 = arith.constant 0 : index
    %11 = vector.load %arg3[%c0_7, %c0_8, %c0_9] : memref<5x128x128xbf16, #tpu.memory_space<vmem>>, vector<1x128x128xbf16>
    %12 = vector.shape_cast %11 : vector<1x128x128xbf16> to vector<128x128xbf16>
    %13 = arith.truncf %10 : vector<128x8xf32> to vector<128x8xbf16>
    %cst_10 = arith.constant dense<0.000000e+00> : vector<128x8xf32>
    %14 = tpu.matmul %12, %13, %cst_10 {dimension_numbers = #tpu.dot_dimension_numbers<[1], [0], [0], [1], [0, 0, 1, 1], [], []>} : vector<128x128xbf16>, vector<128x8xbf16>, vector<128x8xf32> -> vector<128x8xf32>
    %c1 = arith.constant 1 : index
    %c0_11 = arith.constant 0 : index
    %c0_12 = arith.constant 0 : index
    %15 = vector.load %arg5[%c1, %c0_11, %c0_12] : memref<7x128x1xf32, #tpu.memory_space<vmem>>, vector<1x128x1xf32>
    %16 = vector.shape_cast %15 : vector<1x128x1xf32> to vector<128x1xf32>
    %17 = vector.broadcast %16 : vector<128x1xf32> to vector<128x8xf32>
    %18 = arith.addf %14, %17 : vector<128x8xf32>
    %cst_13 = arith.constant 2.000000e-01 : f32
    %19 = vector.broadcast %cst_13 : f32 to vector<128x8xf32>
    %20 = arith.mulf %19, %18 : vector<128x8xf32>
    %21 = arith.maximumf %18, %20 : vector<128x8xf32>
    %c1_14 = arith.constant 1 : index
    %c0_15 = arith.constant 0 : index
    %c0_16 = arith.constant 0 : index
    %22 = vector.load %arg3[%c1_14, %c0_15, %c0_16] : memref<5x128x128xbf16, #tpu.memory_space<vmem>>, vector<1x128x128xbf16>
    %23 = vector.shape_cast %22 : vector<1x128x128xbf16> to vector<128x128xbf16>
    %24 = arith.truncf %21 : vector<128x8xf32> to vector<128x8xbf16>
    %cst_17 = arith.constant dense<0.000000e+00> : vector<128x8xf32>
    %25 = tpu.matmul %23, %24, %cst_17 {dimension_numbers = #tpu.dot_dimension_numbers<[1], [0], [0], [1], [0, 0, 1, 1], [], []>} : vector<128x128xbf16>, vector<128x8xbf16>, vector<128x8xf32> -> vector<128x8xf32>
    %c2 = arith.constant 2 : index
    %c0_18 = arith.constant 0 : index
    %c0_19 = arith.constant 0 : index
    %26 = vector.load %arg5[%c2, %c0_18, %c0_19] : memref<7x128x1xf32, #tpu.memory_space<vmem>>, vector<1x128x1xf32>
    %27 = vector.shape_cast %26 : vector<1x128x1xf32> to vector<128x1xf32>
    %28 = vector.broadcast %27 : vector<128x1xf32> to vector<128x8xf32>
    %29 = arith.addf %25, %28 : vector<128x8xf32>
    %cst_20 = arith.constant 2.000000e-01 : f32
    %30 = vector.broadcast %cst_20 : f32 to vector<128x8xf32>
    %31 = arith.mulf %30, %29 : vector<128x8xf32>
    %32 = arith.maximumf %29, %31 : vector<128x8xf32>
    %c2_21 = arith.constant 2 : index
    %c0_22 = arith.constant 0 : index
    %c0_23 = arith.constant 0 : index
    %33 = vector.load %arg3[%c2_21, %c0_22, %c0_23] : memref<5x128x128xbf16, #tpu.memory_space<vmem>>, vector<1x128x128xbf16>
    %34 = vector.shape_cast %33 : vector<1x128x128xbf16> to vector<128x128xbf16>
    %35 = arith.truncf %32 : vector<128x8xf32> to vector<128x8xbf16>
    %cst_24 = arith.constant dense<0.000000e+00> : vector<128x8xf32>
    %36 = tpu.matmul %34, %35, %cst_24 {dimension_numbers = #tpu.dot_dimension_numbers<[1], [0], [0], [1], [0, 0, 1, 1], [], []>} : vector<128x128xbf16>, vector<128x8xbf16>, vector<128x8xf32> -> vector<128x8xf32>
    %c3 = arith.constant 3 : index
    %c0_25 = arith.constant 0 : index
    %c0_26 = arith.constant 0 : index
    %37 = vector.load %arg5[%c3, %c0_25, %c0_26] : memref<7x128x1xf32, #tpu.memory_space<vmem>>, vector<1x128x1xf32>
    %38 = vector.shape_cast %37 : vector<1x128x1xf32> to vector<128x1xf32>
    %39 = vector.broadcast %38 : vector<128x1xf32> to vector<128x8xf32>
    %40 = arith.addf %36, %39 : vector<128x8xf32>
    %cst_27 = arith.constant 2.000000e-01 : f32
    %41 = vector.broadcast %cst_27 : f32 to vector<128x8xf32>
    %42 = arith.mulf %41, %40 : vector<128x8xf32>
    %43 = arith.maximumf %40, %42 : vector<128x8xf32>
    %c3_28 = arith.constant 3 : index
    %c0_29 = arith.constant 0 : index
    %c0_30 = arith.constant 0 : index
    %44 = vector.load %arg3[%c3_28, %c0_29, %c0_30] : memref<5x128x128xbf16, #tpu.memory_space<vmem>>, vector<1x128x128xbf16>
    %45 = vector.shape_cast %44 : vector<1x128x128xbf16> to vector<128x128xbf16>
    %46 = arith.truncf %43 : vector<128x8xf32> to vector<128x8xbf16>
    %cst_31 = arith.constant dense<0.000000e+00> : vector<128x8xf32>
    %47 = tpu.matmul %45, %46, %cst_31 {dimension_numbers = #tpu.dot_dimension_numbers<[1], [0], [0], [1], [0, 0, 1, 1], [], []>} : vector<128x128xbf16>, vector<128x8xbf16>, vector<128x8xf32> -> vector<128x8xf32>
    %c4 = arith.constant 4 : index
    %c0_32 = arith.constant 0 : index
    %c0_33 = arith.constant 0 : index
    %48 = vector.load %arg5[%c4, %c0_32, %c0_33] : memref<7x128x1xf32, #tpu.memory_space<vmem>>, vector<1x128x1xf32>
    %49 = vector.shape_cast %48 : vector<1x128x1xf32> to vector<128x1xf32>
    %50 = vector.broadcast %49 : vector<128x1xf32> to vector<128x8xf32>
    %51 = arith.addf %47, %50 : vector<128x8xf32>
    %cst_34 = arith.constant 2.000000e-01 : f32
    %52 = vector.broadcast %cst_34 : f32 to vector<128x8xf32>
    %53 = arith.mulf %52, %51 : vector<128x8xf32>
    %54 = arith.maximumf %51, %53 : vector<128x8xf32>
    %c4_35 = arith.constant 4 : index
    %c0_36 = arith.constant 0 : index
    %c0_37 = arith.constant 0 : index
    %55 = vector.load %arg3[%c4_35, %c0_36, %c0_37] : memref<5x128x128xbf16, #tpu.memory_space<vmem>>, vector<1x128x128xbf16>
    %56 = vector.shape_cast %55 : vector<1x128x128xbf16> to vector<128x128xbf16>
    %57 = arith.truncf %54 : vector<128x8xf32> to vector<128x8xbf16>
    %cst_38 = arith.constant dense<0.000000e+00> : vector<128x8xf32>
    %58 = tpu.matmul %56, %57, %cst_38 {dimension_numbers = #tpu.dot_dimension_numbers<[1], [0], [0], [1], [0, 0, 1, 1], [], []>} : vector<128x128xbf16>, vector<128x8xbf16>, vector<128x8xf32> -> vector<128x8xf32>
    %c5 = arith.constant 5 : index
    %c0_39 = arith.constant 0 : index
    %c0_40 = arith.constant 0 : index
    %59 = vector.load %arg5[%c5, %c0_39, %c0_40] : memref<7x128x1xf32, #tpu.memory_space<vmem>>, vector<1x128x1xf32>
    %60 = vector.shape_cast %59 : vector<1x128x1xf32> to vector<128x1xf32>
    %61 = vector.broadcast %60 : vector<128x1xf32> to vector<128x8xf32>
    %62 = arith.addf %58, %61 : vector<128x8xf32>
    %cst_41 = arith.constant 2.000000e-01 : f32
    %63 = vector.broadcast %cst_41 : f32 to vector<128x8xf32>
    %64 = arith.mulf %63, %62 : vector<128x8xf32>
    %65 = arith.maximumf %62, %64 : vector<128x8xf32>
    %c0_42 = arith.constant 0 : index
    %c0_43 = arith.constant 0 : index
    %66 = vector.load %arg4[%c0_42, %c0_43] : memref<8x128xbf16, #tpu.memory_space<vmem>>, vector<8x128xbf16>
    %67 = arith.truncf %65 : vector<128x8xf32> to vector<128x8xbf16>
    %cst_44 = arith.constant dense<0.000000e+00> : vector<8x8xf32>
    %68 = tpu.matmul %66, %67, %cst_44 {dimension_numbers = #tpu.dot_dimension_numbers<[1], [0], [0], [1], [0, 0, 1, 1], [], []>} : vector<8x128xbf16>, vector<128x8xbf16>, vector<8x8xf32> -> vector<8x8xf32>
    %69 = vector.extract_strided_slice %68 {offsets = [0, 0], sizes = [1, 8], strides = [1, 1]} : vector<8x8xf32> to vector<1x8xf32>
    %c6 = arith.constant 6 : index
    %c0_45 = arith.constant 0 : index
    %c0_46 = arith.constant 0 : index
    %70 = vector.load %arg5[%c6, %c0_45, %c0_46] : memref<7x128x1xf32, #tpu.memory_space<vmem>>, vector<1x128x1xf32>
    %71 = vector.shape_cast %70 : vector<1x128x1xf32> to vector<128x1xf32>
    %72 = vector.extract_strided_slice %71 {offsets = [0, 0], sizes = [1, 1], strides = [1, 1]} : vector<128x1xf32> to vector<1x1xf32>
    %73 = vector.broadcast %72 : vector<1x1xf32> to vector<1x8xf32>
    %74 = arith.addf %69, %73 : vector<1x8xf32>
    %cst_47 = arith.constant 0.000000e+00 : f32
    %75 = vector.broadcast %cst_47 : f32 to vector<1x8xf32>
    %76 = arith.subf %75, %74 : vector<1x8xf32>
    %77 = math.exp %76 : vector<1x8xf32>
    %cst_48 = arith.constant 1.000000e+00 : f32
    %78 = vector.broadcast %cst_48 : f32 to vector<1x8xf32>
    %79 = arith.addf %78, %77 : vector<1x8xf32>
    %80 = tpu.reciprocal %79 {approx = true} : vector<1x8xf32> -> vector<1x8xf32>
    %c0_49 = arith.constant 0 : index
    %c0_50 = arith.constant 0 : index
    %81 = vector.load %arg6[%c0_49, %c0_50] : memref<1x8xf32, #tpu.memory_space<vmem>>, vector<1x8xf32>
    tpu.vector_store %arg6[%c0_49, %c0_50], %80 {strides = array<i32>} : memref<1x8xf32, #tpu.memory_space<vmem>>, vector<1x8xf32>,
    return
  }
  func.func @transform_0(%arg0: i32) -> (i32, i32) {
    %c0_i32 = arith.constant 0 : i32
    %c0_i32_0 = arith.constant 0 : i32
    return %arg0, %c0_i32 : i32, i32
  }
  func.func @transform_1(%arg0: i32) -> (i32, i32) {
    %c0_i32 = arith.constant 0 : i32
    %c0_i32_0 = arith.constant 0 : i32
    %c0_i32_1 = arith.constant 0 : i32
    return %c0_i32, %c0_i32_0 : i32, i32
  }
  func.func @transform_2(%arg0: i32) -> (i32, i32, i32) {
    %c0_i32 = arith.constant 0 : i32
    %c0_i32_0 = arith.constant 0 : i32
    %c0_i32_1 = arith.constant 0 : i32
    %c0_i32_2 = arith.constant 0 : i32
    return %c0_i32, %c0_i32_0, %c0_i32_1 : i32, i32, i32
  }
  func.func @transform_3(%arg0: i32) -> (i32, i32) {
    %c0_i32 = arith.constant 0 : i32
    %c0_i32_0 = arith.constant 0 : i32
    %c0_i32_1 = arith.constant 0 : i32
    return %c0_i32, %c0_i32_0 : i32, i32
  }
  func.func @transform_4(%arg0: i32) -> (i32, i32, i32) {
    %c0_i32 = arith.constant 0 : i32
    %c0_i32_0 = arith.constant 0 : i32
    %c0_i32_1 = arith.constant 0 : i32
    %c0_i32_2 = arith.constant 0 : i32
    return %c0_i32, %c0_i32_0, %c0_i32_1 : i32, i32, i32
  }
  func.func @transform_5(%arg0: i32) -> (i32, i32) {
    %c0_i32 = arith.constant 0 : i32
    %c0_i32_0 = arith.constant 0 : i32
    return %c0_i32, %arg0 : i32, i32
  }
}

</mosaic_0001>

<bundles_post_ra>
// kernel: discriminator_forward.1
= control target key start
LH: loop header
LB: loop body
LE: loop exit
PB: predicated region body
PF: predicated region fallthrough
CT: control target
= control target key end

     0   :  { %vm176_vm0 = vcmask 130048   ;;  %v2485_v3 = vmov 0   ;;  %s2991_s0 = inlined_call_operand.vmem [shape: f32[8,16], index: 0, kind: input, shape index: {}]   ;;  %s2992_s1 = inlined_call_operand.vmem [shape: bf16[128,16], index: 1, kind: input, shape index: {}]   ;;  %s2993_s2 = inlined_call_operand.vmem [shape: bf16[5,128,128], index: 2, kind: input, shape index: {}]   ;;  %s2994_s3 = inlined_call_operand.vmem [shape: bf16[8,128], index: 3, kind: input, shape index: {}]   ;;  %s2995_s4 = inlined_call_operand.vmem [shape: f32[7,128,1], index: 4, kind: input, shape index: {}]   ;;  %s2996_s5 = inlined_call_operand.hbm [shape: f32[1,8], index: 5, kind: output, shape index: {}]  }
   0x1   :  { %v42_v0 = vld [vmem:[%s2995_s4 + $0x10] sm:$0xff]  ;;  %v40_v1 = vld [vmem:[%s2995_s4] sm:$0xff]  ;;  %2408 = vset.pattern.permute.xlu1 %v2485_v3  ;;  %2407 = vset.pattern.permute.xlu0 %v2485_v3  ;;  %v43_v5 = vld [vmem:[%s2995_s4 + $0x18] sm:$0xff] }
   0x2   :  { %v38_v2 = vld [vmem:[%s2991_s0] sm:$0xff]  ;;  %68 = vperm.xlu1 %2408, %v42_v0   ;;  %58 = vperm.xlu0 %2407, %v40_v1   ;;  %v41_v6 = vld [vmem:[%s2995_s4 + $0x8] sm:$0xff]  ;;  %v2411_v12 = vld [vmem:[%s2992_s1 + $0x10] sm:$0xff]  }
   0x3   :  { %v39_v4 = vpack.c.bf16 %v38_v2, %v38_v2  ;;  %v2409_v8 = vld [vmem:[%s2992_s1] sm:$0xff]   ;;  %v45_v9 = vld [vmem:[%s2995_s4 + $0x28] sm:$0xff]  ;;  %v47_v13 = vld [vmem:[%s2995_s4 + $0x38] sm:$0xff] }
   0x4   :  { %2206 = vmatprep.mubr.msk.bf16.mxu0 %vm176_vm0, %v2409_v8  ;;  %v44_v10 = vld [vmem:[%s2995_s4 + $0x20] sm:$0xff]  ;;  %v2410_v11 = vld [vmem:[%s2992_s1 + $0x8] sm:$0xff]   ;;  %v46_v14 = vld [vmem:[%s2995_s4 + $0x30] sm:$0xff] }
   0x5   :  { %2402 = vmatprep.subr.msk.bf16.mxu0 %vm176_vm0, %v39_v4  ;;  %v202_v7 = vsel %vm176_vm0, %v39_v4, 0  ;;  %v49_v15 = vld [vmem:[%s2995_s4 + $0x48] sm:$0xff]  ;;  %v48_v16 = vld [vmem:[%s2995_s4 + $0x40] sm:$0xff]  ;;  %v2412_v17 = vld [vmem:[%s2992_s1 + $0x18] sm:$0xff]  }
   0x6   :  { %2205 = vmatpush3.bf16.xpose.msra.mxu0 %v202_v7  ;;  %73 = vperm.xlu1 %2408, %v43_v5   ;;  %v2413_v18 = vld [vmem:[%s2992_s1 + $0x20] sm:$0xff]   ;;  %v51_v19 = vld [vmem:[%s2995_s4 + $0x58] sm:$0xff]  ;;  %v50_v20 = vld [vmem:[%s2995_s4 + $0x50] sm:$0xff] }
   0x7   :  { %63 = vperm.xlu0 %2407, %v41_v6   ;;  %v53_v21 = vld [vmem:[%s2995_s4 + $0x68] sm:$0xff]  ;;  %v52_v22 = vld [vmem:[%s2995_s4 + $0x60] sm:$0xff]  ;;  %v2415_v24 = vld [vmem:[%s2992_s1 + $0x30] sm:$0xff]  }
   0x8   :  { %v2414_v23 = vld [vmem:[%s2992_s1 + $0x28] sm:$0xff]   ;;  %v55_v25 = vld [vmem:[%s2995_s4 + $0x78] sm:$0xff]  ;;  %v54_v26 = vld [vmem:[%s2995_s4 + $0x70] sm:$0xff] }
   0x9   :  { %v1922_v27 = vld [vmem:[%s2995_s4 + $0x88] sm:$0xff]  ;;  %v1921_v28 = vld [vmem:[%s2995_s4 + $0x80] sm:$0xff]  ;;  %v2416_v29 = vld [vmem:[%s2992_s1 + $0x38] sm:$0xff]  }
   0xa   :  { %83 = vperm.xlu1 %2408, %v45_v9   ;;  %v1924_v30 = vld [vmem:[%s2995_s4 + $0x98] sm:$0xff]  ;;  %v1923_v31 = vld [vmem:[%s2995_s4 + $0x90] sm:$0xff]  ;;  %v1926_v32 = vld [vmem:[%s2995_s4 + $0xa8] sm:$0xff] }
   0xb   :  { %78 = vperm.xlu0 %2407, %v44_v10   ;;  %v1925_v33 = vld [vmem:[%s2995_s4 + $0xa0] sm:$0xff]  ;;  %v1928_v34 = vld [vmem:[%s2995_s4 + $0xb8] sm:$0xff]  ;;  %v1927_v35 = vld [vmem:[%s2995_s4 + $0xb0] sm:$0xff] }
   0xc   :  { %v1930_v36 = vld [vmem:[%s2995_s4 + $0xc8] sm:$0xff]  ;;  %v1929_v37 = vld [vmem:[%s2995_s4 + $0xc0] sm:$0xff]  ;;  %v1932_v38 = vld [vmem:[%s2995_s4 + $0xd8] sm:$0xff] }
   0xd   :  { %2207 = vmatmul.mubr.msk.bf16.vlgmr.msra.gmra.mrb[0].mxu0 %vm176_vm0, %v2410_v11  ;;  %v1931_v39 = vld [vmem:[%s2995_s4 + $0xd0] sm:$0xff]  ;;  %v1934_v40 = vld [vmem:[%s2995_s4 + $0xe8] sm:$0xff]  ;;  %v1933_v41 = vld [vmem:[%s2995_s4 + $0xe0] sm:$0xff] }
   0xe   :  { %2210 = vmatprep.mubr.msk.bf16.mxu0 %vm176_vm0, %v2411_v12  ;;  %93 = vperm.xlu1 %2408, %v47_v13   ;;  %v1936_v42 = vld [vmem:[%s2995_s4 + $0xf8] sm:$0xff]  ;;  %v1935_v43 = vld [vmem:[%s2995_s4 + $0xf0] sm:$0xff]  ;;  %v1962_v44 = vld [vmem:[%s2995_s4 + $0x108] sm:$0xff] }
   0xf   :  { %88 = vperm.xlu0 %2407, %v46_v14   ;;  %v1961_v45 = vld [vmem:[%s2995_s4 + $0x100] sm:$0xff]  ;;  %v1964_v46 = vld [vmem:[%s2995_s4 + $0x118] sm:$0xff]  ;;  %v1963_v47 = vld [vmem:[%s2995_s4 + $0x110] sm:$0xff] }
  0x12   :  { %103 = vperm.xlu1 %2408, %v49_v15  }
  0x13   :  { %98 = vperm.xlu0 %2407, %v48_v16  }
  0x15   :  { %2211 = vmatmul.mubr.msk.bf16.gmra.mrb[4].mxu0 %vm176_vm0, %v2412_v17 }
  0x16   :  { %2214 = vmatprep.mubr.msk.bf16.mxu0 %vm176_vm0, %v2413_v18  ;;  %113 = vperm.xlu1 %2408, %v51_v19  }
  0x17   :  { %108 = vperm.xlu0 %2407, %v50_v20  }
  0x1a   :  { %123 = vperm.xlu1 %2408, %v53_v21  }
  0x1b   :  { %118 = vperm.xlu0 %2407, %v52_v22  }
  0x1d   :  { %2215 = vmatmul.mubr.msk.bf16.gmra.mrb[8].mxu0 %vm176_vm0, %v2414_v23 }
  0x1e   :  { %2218 = vmatprep.mubr.msk.bf16.mxu0 %vm176_vm0, %v2415_v24  ;;  %133 = vperm.xlu1 %2408, %v55_v25  }
  0x1f   :  { %128 = vperm.xlu0 %2407, %v54_v26  }
  0x22   :  { %381 = vperm.xlu1 %2408, %v1922_v27  }
  0x23   :  { %376 = vperm.xlu0 %2407, %v1921_v28  }
  0x25   :  { %2219 = vmatmul.mubr.msk.bf16.gmra.mrb[12].mxu0 %vm176_vm0, %v2416_v29 }
  0x26   :  { %391 = vperm.xlu1 %2408, %v1924_v30  }
  0x27   :  { %386 = vperm.xlu0 %2407, %v1923_v31  }
  0x2a   :  { %401 = vperm.xlu1 %2408, %v1926_v32  }
  0x2b   :  { %396 = vperm.xlu0 %2407, %v1925_v33  }
  0x2e   :  { %411 = vperm.xlu1 %2408, %v1928_v34  }
  0x2f   :  { %406 = vperm.xlu0 %2407, %v1927_v35  }
  0x32   :  { %421 = vperm.xlu1 %2408, %v1930_v36  }
  0x33   :  { %416 = vperm.xlu0 %2407, %v1929_v37  }
  0x36   :  { %431 = vperm.xlu1 %2408, %v1932_v38  }
  0x37   :  { %426 = vperm.xlu0 %2407, %v1931_v39  }
  0x3a   :  { %441 = vperm.xlu1 %2408, %v1934_v40  }
  0x3b   :  { %436 = vperm.xlu0 %2407, %v1933_v41  }
  0x3e   :  { %451 = vperm.xlu1 %2408, %v1936_v42  }
  0x3f   :  { %446 = vperm.xlu0 %2407, %v1935_v43  }
  0x42   :  { %680 = vperm.xlu1 %2408, %v1962_v44  }
  0x43   :  { %675 = vperm.xlu0 %2407, %v1961_v45  }
  0x44   :  { %10 = vsyncpa [#allocation3], 0  ;;  %v1966_v48 = vld [vmem:[%s2995_s4 + $0x128] sm:$0xff]  ;;  %v1965_v49 = vld [vmem:[%s2995_s4 + $0x120] sm:$0xff]  ;;  %vm2487_vm1 = vmmov 0   ;;  %s2488_s13 = smov [#allocation2]  }
  0x45   :  { %v1968_v50 = vld [vmem:[%s2995_s4 + $0x138] sm:$0xff]  ;;  %v1967_v51 = vld [vmem:[%s2995_s4 + $0x130] sm:$0xff]  ;;  %v1970_v52 = vld [vmem:[%s2995_s4 + $0x148] sm:$0xff]  ;;  %s1897_s14 = sshll.u32 %s2488_s13, 4  ;;  %vm1889_vm2 = vcmask 57344   ;;  %s1898_s14 = int_to_ptr.vmem [resolvable:$true] %s1897_s14 }
  0x46   :  { %690 = vperm.xlu1 %2408, %v1964_v46   ;;  %v1969_v53 = vld [vmem:[%s2995_s4 + $0x140] sm:$0xff]  ;;  %v1972_v54 = vld [vmem:[%s2995_s4 + $0x158] sm:$0xff]  ;;  %v1971_v55 = vld [vmem:[%s2995_s4 + $0x150] sm:$0xff]  ;;  %s2465_s15 = scalar_lea.vmem %s1898_s14, 32  ;;  %p2466_p1 = scmp.lt.s32.totalorder %s1898_s14, %s1898_s14 }
  0x47   :  { %685 = vperm.xlu0 %2407, %v1963_v47   ;;  %v1974_v56 = vld [vmem:[%s2995_s4 + $0x168] sm:$0xff]  ;;  %v1973_v57 = vld [vmem:[%s2995_s4 + $0x160] sm:$0xff]  ;;  %v1976_v58 = vld [vmem:[%s2995_s4 + $0x178] sm:$0xff] }
  0x48   :  { %v1975_v59 = vld [vmem:[%s2995_s4 + $0x170] sm:$0xff]  ;;  %v2002_v60 = vld [vmem:[%s2995_s4 + $0x188] sm:$0xff]  ;;  %v2001_v61 = vld [vmem:[%s2995_s4 + $0x180] sm:$0xff] }
  0x49   :  { %v2004_v62 = vld [vmem:[%s2995_s4 + $0x198] sm:$0xff]  ;;  %v2003_v63 = vld [vmem:[%s2995_s4 + $0x190] sm:$0xff]  ;;  %v2006_v0 = vld [vmem:[%s2995_s4 + $0x1a8] sm:$0xff] }
  0x4a   :  { %700 = vperm.xlu1 %2408, %v1966_v48   ;;  %v2005_v1 = vld [vmem:[%s2995_s4 + $0x1a0] sm:$0xff]  ;;  %v2008_v2 = vld [vmem:[%s2995_s4 + $0x1b8] sm:$0xff]  ;;  %v2007_v3 = vld [vmem:[%s2995_s4 + $0x1b0] sm:$0xff] }
  0x4b   :  { %695 = vperm.xlu0 %2407, %v1965_v49   ;;  %v2010_v4 = vld [vmem:[%s2995_s4 + $0x1c8] sm:$0xff]  ;;  %v2009_v5 = vld [vmem:[%s2995_s4 + $0x1c0] sm:$0xff]  ;;  %v2012_v6 = vld [vmem:[%s2995_s4 + $0x1d8] sm:$0xff] }
  0x4c   :  { %v2011_v7 = vld [vmem:[%s2995_s4 + $0x1d0] sm:$0xff]  ;;  %v2014_v8 = vld [vmem:[%s2995_s4 + $0x1e8] sm:$0xff]  ;;  %v2013_v9 = vld [vmem:[%s2995_s4 + $0x1e0] sm:$0xff] }
  0x4d   :  { %v2016_v10 = vld [vmem:[%s2995_s4 + $0x1f8] sm:$0xff]  ;;  %v2015_v11 = vld [vmem:[%s2995_s4 + $0x1f0] sm:$0xff]  ;;  %v2042_v12 = vld [vmem:[%s2995_s4 + $0x208] sm:$0xff] }
  0x4e   :  { %710 = vperm.xlu1 %2408, %v1968_v50   ;;  %v2041_v13 = vld [vmem:[%s2995_s4 + $0x200] sm:$0xff]  ;;  %v2044_v14 = vld [vmem:[%s2995_s4 + $0x218] sm:$0xff]  ;;  %v2043_v15 = vld [vmem:[%s2995_s4 + $0x210] sm:$0xff] }
  0x4f   :  { %705 = vperm.xlu0 %2407, %v1967_v51   ;;  %v2046_v16 = vld [vmem:[%s2995_s4 + $0x228] sm:$0xff]  ;;  %v2045_v17 = vld [vmem:[%s2995_s4 + $0x220] sm:$0xff]  ;;  %v2048_v19 = vld [vmem:[%s2995_s4 + $0x238] sm:$0xff] }
  0x50   :  { %v2417_v18 = vld [vmem:[%s2993_s2] sm:$0xff]   ;;  %v2047_v20 = vld [vmem:[%s2995_s4 + $0x230] sm:$0xff]  ;;  %v2050_v21 = vld [vmem:[%s2995_s4 + $0x248] sm:$0xff] }
  0x51   :  { %2238 = vmatprep.mubr.bf16.mxu1 %v2417_v18  ;;  %v2049_v22 = vld [vmem:[%s2995_s4 + $0x240] sm:$0xff]  ;;  %v2052_v23 = vld [vmem:[%s2995_s4 + $0x258] sm:$0xff]  ;;  %v2051_v24 = vld [vmem:[%s2995_s4 + $0x250] sm:$0xff] }
  0x52   :  { %720 = vperm.xlu1 %2408, %v1970_v52   ;;  %v2054_v25 = vld [vmem:[%s2995_s4 + $0x268] sm:$0xff]  ;;  %v2053_v26 = vld [vmem:[%s2995_s4 + $0x260] sm:$0xff]  ;;  %v2056_v27 = vld [vmem:[%s2995_s4 + $0x278] sm:$0xff] }
  0x53   :  { %715 = vperm.xlu0 %2407, %v1969_v53   ;;  %v2055_v28 = vld [vmem:[%s2995_s4 + $0x270] sm:$0xff]  ;;  %v2082_v29 = vld [vmem:[%s2995_s4 + $0x288] sm:$0xff]  ;;  %v2081_v30 = vld [vmem:[%s2995_s4 + $0x280] sm:$0xff] }
  0x54   :  { %v2084_v31 = vld [vmem:[%s2995_s4 + $0x298] sm:$0xff]  ;;  %v2083_v32 = vld [vmem:[%s2995_s4 + $0x290] sm:$0xff]  ;;  %v2086_v33 = vld [vmem:[%s2995_s4 + $0x2a8] sm:$0xff] }
  0x55   :  { %v2085_v34 = vld [vmem:[%s2995_s4 + $0x2a0] sm:$0xff]  ;;  %v2088_v35 = vld [vmem:[%s2995_s4 + $0x2b8] sm:$0xff]  ;;  %v2087_v36 = vld [vmem:[%s2995_s4 + $0x2b0] sm:$0xff] }
  0x56   :  { %730 = vperm.xlu1 %2408, %v1972_v54   ;;  %v2090_v37 = vld [vmem:[%s2995_s4 + $0x2c8] sm:$0xff]  ;;  %v2089_v38 = vld [vmem:[%s2995_s4 + $0x2c0] sm:$0xff]  ;;  %v2092_v39 = vld [vmem:[%s2995_s4 + $0x2d8] sm:$0xff] }
  0x57   :  { %725 = vperm.xlu0 %2407, %v1971_v55   ;;  %v2091_v40 = vld [vmem:[%s2995_s4 + $0x2d0] sm:$0xff]  ;;  %v2094_v41 = vld [vmem:[%s2995_s4 + $0x2e8] sm:$0xff]  ;;  %v2093_v42 = vld [vmem:[%s2995_s4 + $0x2e0] sm:$0xff] }
  0x58   :  { %v2096_v43 = vld [vmem:[%s2995_s4 + $0x2f8] sm:$0xff]  ;;  %v2095_v44 = vld [vmem:[%s2995_s4 + $0x2f0] sm:$0xff]  ;;  %v2105_v45 = vld [vmem:[%s2995_s4 + $0x300] sm:$0xff] }
  0x5a   :  { %740 = vperm.xlu1 %2408, %v1974_v56  }
  0x5b   :  { %735 = vperm.xlu0 %2407, %v1973_v57  }
  0x5e   :  { %750 = vperm.xlu1 %2408, %v1976_v58  }
  0x5f   :  { %745 = vperm.xlu0 %2407, %v1975_v59  }
  0x62   :  { %979 = vperm.xlu1 %2408, %v2002_v60  }
  0x63   :  { %974 = vperm.xlu0 %2407, %v2001_v61  }
  0x66   :  { %989 = vperm.xlu1 %2408, %v2004_v62  }
  0x67   :  { %984 = vperm.xlu0 %2407, %v2003_v63  }
  0x6a   :  { %999 = vperm.xlu1 %2408, %v2006_v0  }
  0x6b   :  { %994 = vperm.xlu0 %2407, %v2005_v1  }
  0x6e   :  { %1009 = vperm.xlu1 %2408, %v2008_v2  }
  0x6f   :  { %1004 = vperm.xlu0 %2407, %v2007_v3  }
  0x72   :  { %1019 = vperm.xlu1 %2408, %v2010_v4  }
  0x73   :  { %1014 = vperm.xlu0 %2407, %v2009_v5  }
  0x76   :  { %1029 = vperm.xlu1 %2408, %v2012_v6  }
  0x77   :  { %1024 = vperm.xlu0 %2407, %v2011_v7  }
  0x7a   :  { %1039 = vperm.xlu1 %2408, %v2014_v8  }
  0x7b   :  { %1034 = vperm.xlu0 %2407, %v2013_v9  }
  0x7e   :  { %1049 = vperm.xlu1 %2408, %v2016_v10  }
  0x7f   :  { %1044 = vperm.xlu0 %2407, %v2015_v11  }
  0x81   :  { %v59_v46 = vpop.permute.xlu0 %58  ;;  %v69_v47 = vpop.permute.xlu1 %68 }
  0x82   :  { %1278 = vperm.xlu1 %2408, %v2042_v12  }
  0x83   :  { %1273 = vperm.xlu0 %2407, %v2041_v13  }
  0x85   :  { %v74_v49 = vpop.permute.xlu1 %73 }
  0x86   :  { %1288 = vperm.xlu1 %2408, %v2044_v14   ;;  %v64_v48 = vpop.permute.xlu0 %63 }
  0x87   :  { %1283 = vperm.xlu0 %2407, %v2043_v15  }
  0x89   :  { %v84_v51 = vpop.permute.xlu1 %83 }
  0x8a   :  { %1298 = vperm.xlu1 %2408, %v2046_v16   ;;  %v79_v50 = vpop.permute.xlu0 %78 }
  0x8b   :  { %1293 = vperm.xlu0 %2407, %v2045_v17  }
  0x8d   :  { %v94_v56 = vpop.permute.xlu1 %93 }
  0x8e   :  { %1308 = vperm.xlu1 %2408, %v2048_v19   ;;  %v89_v52 = vpop.permute.xlu0 %88 }
  0x8f   :  { %1303 = vperm.xlu0 %2407, %v2047_v20  }
  0x91   :  { %v104_v5 = vpop.permute.xlu1 %103 }
  0x92   :  { %1318 = vperm.xlu1 %2408, %v2050_v21   ;;  %v99_v1 = vpop.permute.xlu0 %98 }
  0x93   :  { %1313 = vperm.xlu0 %2407, %v2049_v22  }
  0x95   :  { %v114_v22 = vpop.permute.xlu1 %113 }
  0x96   :  { %1328 = vperm.xlu1 %2408, %v2052_v23   ;;  %v109_v17 = vpop.permute.xlu0 %108 }
  0x97   :  { %1323 = vperm.xlu0 %2407, %v2051_v24  }
  0x9a   :  { %1338 = vperm.xlu1 %2408, %v2054_v25  }
  0x9b   :  { %1333 = vperm.xlu0 %2407, %v2053_v26  }
  0x9e   :  { %1348 = vperm.xlu1 %2408, %v2056_v27  }
  0x9f   :  { %1343 = vperm.xlu0 %2407, %v2055_v28  }
  0xa2   :  { %1577 = vperm.xlu1 %2408, %v2082_v29  }
  0xa3   :  { %1572 = vperm.xlu0 %2407, %v2081_v30  }
  0xa6   :  { %1587 = vperm.xlu1 %2408, %v2084_v31  }
  0xa7   :  { %1582 = vperm.xlu0 %2407, %v2083_v32   ;;  %v119_v32 = vpop.permute.xlu0 %118 }
  0xaa   :  { %1597 = vperm.xlu1 %2408, %v2086_v33  }
  0xab   :  { %1592 = vperm.xlu0 %2407, %v2085_v34  }
  0xae   :  { %1607 = vperm.xlu1 %2408, %v2088_v35  }
  0xaf   :  { %1602 = vperm.xlu0 %2407, %v2087_v36  }
  0xb2   :  { %1617 = vperm.xlu1 %2408, %v2090_v37  }
  0xb3   :  { %1612 = vperm.xlu0 %2407, %v2089_v38   ;;  %v124_v38 = vpop.permute.xlu1 %123 }
  0xb6   :  { %1627 = vperm.xlu1 %2408, %v2092_v39  }
  0xb7   :  { %1622 = vperm.xlu0 %2407, %v2091_v40  }
  0xba   :  { %1637 = vperm.xlu1 %2408, %v2094_v41  }
  0xbb   :  { %1632 = vperm.xlu0 %2407, %v2093_v42  }
  0xbe   :  { %1647 = vperm.xlu1 %2408, %v2096_v43  }
  0xbf   :  { %1642 = vperm.xlu0 %2407, %v2095_v44  }
  0xc3   :  { %1880 = vperm.xlu0 %2407, %v2105_v45  }
  0xe0   :  { %v2208_v53 = vpop.f32.mrb[0].mxu0 }
  0xe1   :  { %v247_v54 = vadd.f32 %v2208_v53, %v69_v47  ;;  %v238_v55 = vpop.f32.mrb[1].mxu0  ;;  %v134_v53 = vpop.permute.xlu1 %133 }
  0xe2   :  { %v239_v57 = vadd.f32 %v238_v55, %v59_v46  ;;  %v2209_v58 = vpop.f32.mrb[2].mxu0  ;;  %v129_v46 = vpop.permute.xlu0 %128 }
  0xe3   :  { %v303_v59 = vmul.f32 0.2, %v247_v54  ;;  %v250_v60 = vadd.f32 %v2209_v58, %v74_v49  ;;  %v241_v61 = vpop.f32.mrb[3].mxu0 }
  0xe4   :  { %v301_v62 = vmul.f32 0.2, %v239_v57  ;;  %v242_v0 = vadd.f32 %v241_v61, %v64_v48 }
  0xe5   :  { %v304_v63 = vmul.f32 0.2, %v250_v60  ;;  %v319_v2 = vmax.f32 %v247_v54, %v303_v59 }
  0xe6   :  { %v302_v4 = vmul.f32 0.2, %v242_v0  ;;  %v317_v7 = vmax.f32 %v239_v57, %v301_v62 }
  0xe7   :  { %v320_v3 = vmax.f32 %v250_v60, %v304_v63 }
  0xe8   :  { %v2212_v6 = vpop.f32.mrb[4].mxu0  ;;  %v318_v8 = vmax.f32 %v242_v0, %v302_v4 }
  0xe9   :  { %v263_v9 = vadd.f32 %v2212_v6, %v89_v52  ;;  %v254_v10 = vpop.f32.mrb[5].mxu0  ;;  %v350_v11 = vpack.c.bf16 %v320_v3, %v319_v2  ;;  %v2418_v6 = vld [vmem:[%s2993_s2 + $0x8] sm:$0xff]  }
  0xea   :  { %v255_v12 = vadd.f32 %v254_v10, %v79_v50  ;;  %v2213_v13 = vpop.f32.mrb[6].mxu0  ;;  %v349_v16 = vpack.c.bf16 %v318_v8, %v317_v7  ;;  %v2419_v7 = vld [vmem:[%s2993_s2 + $0x10] sm:$0xff]   ;;  %v2420_v8 = vld [vmem:[%s2993_s2 + $0x18] sm:$0xff]   ;;  %v2422_v10 = vld [vmem:[%s2993_s2 + $0x28] sm:$0xff]  }
  0xeb   :  { %v307_v14 = vmul.f32 0.2, %v263_v9  ;;  %v266_v15 = vadd.f32 %v2213_v13, %v94_v56  ;;  %v257_v18 = vpop.f32.mrb[7].mxu0  ;;  %v2425_v13 = vld [vmem:[%s2993_s2 + $0x40] sm:$0xff]  }
  0xec   :  { %v305_v19 = vmul.f32 0.2, %v255_v12  ;;  %v258_v21 = vadd.f32 %v257_v18, %v84_v51  ;;  %2222 = vmatprep.subr.bf16.mxu1 %v349_v16  ;;  %2270 = vmatprep.mubr.bf16.mxu0 %v2425_v13 }
  0xed   :  { %v308_v20 = vmul.f32 0.2, %v266_v15  ;;  %2223 = vmatpush3.bf16.msra.mxu1 %v349_v16  ;;  %v323_v23 = vmax.f32 %v263_v9, %v307_v14  ;;  %v2421_v9 = vld [vmem:[%s2993_s2 + $0x20] sm:$0xff]   ;;  %v377_v14 = vpop.permute.xlu0 %376 }
  0xee   :  { %v306_v25 = vmul.f32 0.2, %v258_v21  ;;  %2224 = vmatprep.subr.bf16.mxu1 %v350_v11  ;;  %v321_v27 = vmax.f32 %v255_v12, %v305_v19  ;;  %v2424_v12 = vld [vmem:[%s2993_s2 + $0x38] sm:$0xff]  }
  0xef   :  { %v324_v24 = vmax.f32 %v266_v15, %v308_v20  ;;  %v382_v15 = vpop.permute.xlu1 %381 }
  0xf0   :  { %v2216_v26 = vpop.f32.mrb[8].mxu0  ;;  %v322_v28 = vmax.f32 %v258_v21, %v306_v25 }
  0xf1   :  { %v279_v29 = vadd.f32 %v2216_v26, %v109_v17  ;;  %v270_v30 = vpop.f32.mrb[9].mxu0  ;;  %v352_v31 = vpack.c.bf16 %v324_v24, %v323_v23  ;;  %2225 = vmatpush3.bf16.msra.mxu1 %v350_v11  ;;  %v2423_v11 = vld [vmem:[%s2993_s2 + $0x30] sm:$0xff]   ;;  %v387_v16 = vpop.permute.xlu0 %386 }
  0xf2   :  { %v271_v33 = vadd.f32 %v270_v30, %v99_v1  ;;  %v2217_v34 = vpop.f32.mrb[10].mxu0  ;;  %v351_v37 = vpack.c.bf16 %v322_v28, %v321_v27 }
  0xf3   :  { %v311_v35 = vmul.f32 0.2, %v279_v29  ;;  %v282_v36 = vadd.f32 %v2217_v34, %v114_v22  ;;  %v273_v39 = vpop.f32.mrb[11].mxu0  ;;  %v392_v17 = vpop.permute.xlu1 %391 }
  0xf4   :  { %v309_v40 = vmul.f32 0.2, %v271_v33  ;;  %v274_v42 = vadd.f32 %v273_v39, %v104_v5  ;;  %2226 = vmatprep.subr.bf16.mxu1 %v351_v37 }
  0xf5   :  { %v312_v41 = vmul.f32 0.2, %v282_v36  ;;  %2227 = vmatpush3.bf16.msra.mxu1 %v351_v37  ;;  %v327_v43 = vmax.f32 %v279_v29, %v311_v35  ;;  %v397_v18 = vpop.permute.xlu0 %396 }
  0xf6   :  { %v310_v45 = vmul.f32 0.2, %v274_v42  ;;  %2228 = vmatprep.subr.bf16.mxu1 %v352_v31  ;;  %v325_v48 = vmax.f32 %v271_v33, %v309_v40 }
  0xf7   :  { %v328_v44 = vmax.f32 %v282_v36, %v312_v41  ;;  %v402_v19 = vpop.permute.xlu1 %401 }
  0xf8   :  { %v2220_v47 = vpop.f32.mrb[12].mxu0  ;;  %v326_v49 = vmax.f32 %v274_v42, %v310_v45 }
  0xf9   :  { %v295_v50 = vadd.f32 %v2220_v47, %v129_v46  ;;  %v286_v51 = vpop.f32.mrb[13].mxu0  ;;  %v354_v52 = vpack.c.bf16 %v328_v44, %v327_v43  ;;  %2229 = vmatpush3.bf16.msra.mxu1 %v352_v31  ;;  %v407_v20 = vpop.permute.xlu0 %406 }
  0xfa   :  { %v287_v54 = vadd.f32 %v286_v51, %v119_v32  ;;  %v2221_v55 = vpop.f32.mrb[14].mxu0  ;;  %v353_v58 = vpack.c.bf16 %v326_v49, %v325_v48 }
  0xfb   :  { %v315_v56 = vmul.f32 0.2, %v295_v50  ;;  %v298_v57 = vadd.f32 %v2221_v55, %v134_v53  ;;  %v289_v59 = vpop.f32.mrb[15].mxu0  ;;  %v412_v24 = vpop.permute.xlu1 %411 }
  0xfc   :  { %v313_v60 = vmul.f32 0.2, %v287_v54  ;;  %v290_v62 = vadd.f32 %v289_v59, %v124_v38  ;;  %2230 = vmatprep.subr.bf16.mxu1 %v353_v58 }
  0xfd   :  { %v316_v61 = vmul.f32 0.2, %v298_v57  ;;  %2231 = vmatpush3.bf16.msra.mxu1 %v353_v58  ;;  %v331_v63 = vmax.f32 %v295_v50, %v315_v56  ;;  %v417_v33 = vpop.permute.xlu0 %416 }
  0xfe   :  { %v314_v1 = vmul.f32 0.2, %v290_v62  ;;  %2232 = vmatprep.subr.bf16.mxu1 %v354_v52  ;;  %v329_v2 = vmax.f32 %v287_v54, %v313_v60 }
  0xff   :  { %v332_v0 = vmax.f32 %v298_v57, %v316_v61  ;;  %v422_v37 = vpop.permute.xlu1 %421 }
 0x100   :  { %v330_v3 = vmax.f32 %v290_v62, %v314_v1 }
 0x101   :  { %v356_v4 = vpack.c.bf16 %v332_v0, %v331_v63  ;;  %2233 = vmatpush3.bf16.msra.mxu1 %v354_v52  ;;  %v427_v50 = vpop.permute.xlu0 %426 }
 0x102   :  { %v355_v5 = vpack.c.bf16 %v330_v3, %v329_v2 }
 0x103   :  { %v432_v54 = vpop.permute.xlu1 %431 }
 0x104   :  { %2234 = vmatprep.subr.bf16.mxu1 %v355_v5 }
 0x105   :  { %2235 = vmatpush3.bf16.msra.mxu1 %v355_v5  ;;  %v437_v0 = vpop.permute.xlu0 %436 }
 0x106   :  { %2236 = vmatprep.subr.bf16.mxu1 %v356_v4 }
 0x109   :  { %2237 = vmatpush3.bf16.msra.mxu1 %v356_v4 }
 0x10c   :  { %2239 = vmatmul.mubr.bf16.vlgmr.msra.gmra.mrb[0].mxu1 %v2418_v6 }
 0x10d   :  { %2242 = vmatprep.mubr.bf16.mxu1 %v2419_v7  ;;  %v442_v7 = vpop.permute.xlu1 %441 }
 0x114   :  { %2243 = vmatmul.mubr.bf16.gmra.mrb[4].mxu1 %v2420_v8 }
 0x115   :  { %2246 = vmatprep.mubr.bf16.mxu1 %v2421_v9 }
 0x11c   :  { %2247 = vmatmul.mubr.bf16.gmra.mrb[8].mxu1 %v2422_v10 }
 0x11d   :  { %2250 = vmatprep.mubr.bf16.mxu1 %v2423_v11 }
 0x124   :  { %2251 = vmatmul.mubr.bf16.gmra.mrb[12].mxu1 %v2424_v12 }
 0x1df   :  { %v2240_v21 = vpop.f32.mrb[0].mxu1 }
 0x1e0   :  { %v545_v22 = vadd.f32 %v2240_v21, %v387_v16  ;;  %v536_v23 = vpop.f32.mrb[1].mxu1  ;;  %v452_v21 = vpop.permute.xlu1 %451 }
 0x1e1   :  { %v537_v25 = vadd.f32 %v536_v23, %v377_v14  ;;  %v2241_v26 = vpop.f32.mrb[2].mxu1  ;;  %v447_v14 = vpop.permute.xlu0 %446 }
 0x1e2   :  { %v601_v27 = vmul.f32 0.2, %v545_v22  ;;  %v548_v28 = vadd.f32 %v2241_v26, %v392_v17  ;;  %v539_v29 = vpop.f32.mrb[3].mxu1 }
 0x1e3   :  { %v599_v30 = vmul.f32 0.2, %v537_v25  ;;  %v540_v31 = vadd.f32 %v539_v29, %v382_v15 }
 0x1e4   :  { %v602_v32 = vmul.f32 0.2, %v548_v28  ;;  %v617_v35 = vmax.f32 %v545_v22, %v601_v27 }
 0x1e5   :  { %v600_v34 = vmul.f32 0.2, %v540_v31  ;;  %v615_v38 = vmax.f32 %v537_v25, %v599_v30 }
 0x1e6   :  { %v618_v36 = vmax.f32 %v548_v28, %v602_v32 }
 0x1e7   :  { %v616_v39 = vmax.f32 %v540_v31, %v600_v34  ;;  %v2244_v40 = vpop.f32.mrb[4].mxu1 }
 0x1e8   :  { %v561_v41 = vadd.f32 %v2244_v40, %v407_v20  ;;  %v552_v42 = vpop.f32.mrb[5].mxu1  ;;  %v649_v43 = vpack.c.bf16 %v618_v36, %v617_v35  ;;  %v2428_v40 = vld [vmem:[%s2993_s2 + $0x58] sm:$0xff]  }
 0x1e9   :  { %v553_v44 = vadd.f32 %v552_v42, %v397_v18  ;;  %v2245_v45 = vpop.f32.mrb[6].mxu1  ;;  %v648_v46 = vpack.c.bf16 %v616_v39, %v615_v38  ;;  %v2426_v38 = vld [vmem:[%s2993_s2 + $0x48] sm:$0xff]   ;;  %v2427_v39 = vld [vmem:[%s2993_s2 + $0x50] sm:$0xff]  }
 0x1ea   :  { %v605_v47 = vmul.f32 0.2, %v561_v41  ;;  %v564_v48 = vadd.f32 %v2245_v45, %v412_v24  ;;  %v555_v49 = vpop.f32.mrb[7].mxu1  ;;  %v2430_v42 = vld [vmem:[%s2993_s2 + $0x68] sm:$0xff]   ;;  %v2433_v45 = vld [vmem:[%s2993_s2 + $0x80] sm:$0xff]  }
 0x1eb   :  { %v603_v51 = vmul.f32 0.2, %v553_v44  ;;  %v556_v52 = vadd.f32 %v555_v49, %v402_v19  ;;  %2254 = vmatprep.subr.bf16.mxu0 %v648_v46  ;;  %2302 = vmatprep.mubr.bf16.mxu1 %v2433_v45 }
 0x1ec   :  { %v606_v53 = vmul.f32 0.2, %v564_v48  ;;  %2255 = vmatpush3.bf16.msra.mxu0 %v648_v46  ;;  %v621_v56 = vmax.f32 %v561_v41, %v605_v47  ;;  %v2429_v41 = vld [vmem:[%s2993_s2 + $0x60] sm:$0xff]   ;;  %v676_v46 = vpop.permute.xlu0 %675  ;;  %v681_v47 = vpop.permute.xlu1 %680 }
 0x1ed   :  { %v604_v55 = vmul.f32 0.2, %v556_v52  ;;  %2256 = vmatprep.subr.bf16.mxu0 %v649_v43  ;;  %v619_v58 = vmax.f32 %v553_v44, %v603_v51  ;;  %v2432_v44 = vld [vmem:[%s2993_s2 + $0x78] sm:$0xff]  }
 0x1ee   :  { %v622_v57 = vmax.f32 %v564_v48, %v606_v53 }
 0x1ef   :  { %v620_v59 = vmax.f32 %v556_v52, %v604_v55  ;;  %v2248_v60 = vpop.f32.mrb[8].mxu1 }
 0x1f0   :  { %v577_v61 = vadd.f32 %v2248_v60, %v427_v50  ;;  %v568_v62 = vpop.f32.mrb[9].mxu1  ;;  %2257 = vmatpush3.bf16.msra.mxu0 %v649_v43  ;;  %v651_v63 = vpack.c.bf16 %v622_v57, %v621_v56  ;;  %v2431_v43 = vld [vmem:[%s2993_s2 + $0x70] sm:$0xff]   ;;  %v686_v48 = vpop.permute.xlu0 %685 }
 0x1f1   :  { %v569_v1 = vadd.f32 %v568_v62, %v417_v33  ;;  %v2249_v2 = vpop.f32.mrb[10].mxu1  ;;  %v650_v3 = vpack.c.bf16 %v620_v59, %v619_v58  ;;  %v691_v49 = vpop.permute.xlu1 %690 }
 0x1f2   :  { %v609_v4 = vmul.f32 0.2, %v577_v61  ;;  %v580_v5 = vadd.f32 %v2249_v2, %v432_v54  ;;  %v571_v6 = vpop.f32.mrb[11].mxu1 }
 0x1f3   :  { %v607_v8 = vmul.f32 0.2, %v569_v1  ;;  %v572_v9 = vadd.f32 %v571_v6, %v422_v37  ;;  %2258 = vmatprep.subr.bf16.mxu0 %v650_v3 }
 0x1f4   :  { %v610_v10 = vmul.f32 0.2, %v580_v5  ;;  %2259 = vmatpush3.bf16.msra.mxu0 %v650_v3  ;;  %v625_v12 = vmax.f32 %v577_v61, %v609_v4  ;;  %v696_v50 = vpop.permute.xlu0 %695 }
 0x1f5   :  { %v608_v11 = vmul.f32 0.2, %v572_v9  ;;  %2260 = vmatprep.subr.bf16.mxu0 %v651_v63  ;;  %v623_v15 = vmax.f32 %v569_v1, %v607_v8  ;;  %v701_v51 = vpop.permute.xlu1 %700 }
 0x1f6   :  { %v626_v13 = vmax.f32 %v580_v5, %v610_v10 }
 0x1f7   :  { %v624_v16 = vmax.f32 %v572_v9, %v608_v11  ;;  %v2252_v17 = vpop.f32.mrb[12].mxu1 }
 0x1f8   :  { %v593_v18 = vadd.f32 %v2252_v17, %v447_v14  ;;  %v584_v19 = vpop.f32.mrb[13].mxu1  ;;  %2261 = vmatpush3.bf16.msra.mxu0 %v651_v63  ;;  %v653_v20 = vpack.c.bf16 %v626_v13, %v625_v12  ;;  %v706_v52 = vpop.permute.xlu0 %705 }
 0x1f9   :  { %v585_v22 = vadd.f32 %v584_v19, %v437_v0  ;;  %v2253_v23 = vpop.f32.mrb[14].mxu1  ;;  %v652_v24 = vpack.c.bf16 %v624_v16, %v623_v15  ;;  %v711_v56 = vpop.permute.xlu1 %710 }
 0x1fa   :  { %v613_v25 = vmul.f32 0.2, %v593_v18  ;;  %v596_v26 = vadd.f32 %v2253_v23, %v452_v21  ;;  %v587_v27 = vpop.f32.mrb[15].mxu1 }
 0x1fb   :  { %v611_v28 = vmul.f32 0.2, %v585_v22  ;;  %v588_v29 = vadd.f32 %v587_v27, %v442_v7  ;;  %2262 = vmatprep.subr.bf16.mxu0 %v652_v24 }
 0x1fc   :  { %v614_v30 = vmul.f32 0.2, %v596_v26  ;;  %2263 = vmatpush3.bf16.msra.mxu0 %v652_v24  ;;  %v629_v32 = vmax.f32 %v593_v18, %v613_v25  ;;  %v716_v1 = vpop.permute.xlu0 %715 }
 0x1fd   :  { %v612_v31 = vmul.f32 0.2, %v588_v29  ;;  %2264 = vmatprep.subr.bf16.mxu0 %v653_v20  ;;  %v627_v34 = vmax.f32 %v585_v22, %v611_v28  ;;  %v721_v5 = vpop.permute.xlu1 %720 }
 0x1fe   :  { %v630_v33 = vmax.f32 %v596_v26, %v614_v30 }
 0x1ff   :  { %v628_v35 = vmax.f32 %v588_v29, %v612_v31 }
 0x200   :  { %2265 = vmatpush3.bf16.msra.mxu0 %v653_v20  ;;  %v655_v36 = vpack.c.bf16 %v630_v33, %v629_v32  ;;  %v726_v18 = vpop.permute.xlu0 %725 }
 0x201   :  { %v654_v37 = vpack.c.bf16 %v628_v35, %v627_v34  ;;  %v731_v22 = vpop.permute.xlu1 %730 }
 0x203   :  { %2266 = vmatprep.subr.bf16.mxu0 %v654_v37 }
 0x204   :  { %2267 = vmatpush3.bf16.msra.mxu0 %v654_v37  ;;  %v736_v32 = vpop.permute.xlu0 %735 }
 0x205   :  { %2268 = vmatprep.subr.bf16.mxu0 %v655_v36 }
 0x208   :  { %2269 = vmatpush3.bf16.msra.mxu0 %v655_v36 }
 0x20b   :  { %2271 = vmatmul.mubr.bf16.vlgmr.msra.gmra.mrb[16].mxu0 %v2426_v38 }
 0x20c   :  { %2274 = vmatprep.mubr.bf16.mxu0 %v2427_v39  ;;  %v741_v39 = vpop.permute.xlu1 %740 }
 0x213   :  { %2275 = vmatmul.mubr.bf16.gmra.mrb[20].mxu0 %v2428_v40 }
 0x214   :  { %2278 = vmatprep.mubr.bf16.mxu0 %v2429_v41 }
 0x21b   :  { %2279 = vmatmul.mubr.bf16.gmra.mrb[24].mxu0 %v2430_v42 }
 0x21c   :  { %2282 = vmatprep.mubr.bf16.mxu0 %v2431_v43 }
 0x223   :  { %2283 = vmatmul.mubr.bf16.gmra.mrb[28].mxu0 %v2432_v44 }
 0x2de   :  { %v2272_v53 = vpop.f32.mrb[16].mxu0 }
 0x2df   :  { %v844_v54 = vadd.f32 %v2272_v53, %v686_v48  ;;  %v835_v55 = vpop.f32.mrb[17].mxu0  ;;  %v751_v53 = vpop.permute.xlu1 %750 }
 0x2e0   :  { %v836_v57 = vadd.f32 %v835_v55, %v676_v46  ;;  %v2273_v58 = vpop.f32.mrb[18].mxu0  ;;  %v746_v46 = vpop.permute.xlu0 %745 }
 0x2e1   :  { %v900_v59 = vmul.f32 0.2, %v844_v54  ;;  %v847_v60 = vadd.f32 %v2273_v58, %v691_v49  ;;  %v838_v61 = vpop.f32.mrb[19].mxu0 }
 0x2e2   :  { %v898_v62 = vmul.f32 0.2, %v836_v57  ;;  %v839_v63 = vadd.f32 %v838_v61, %v681_v47 }
 0x2e3   :  { %v901_v0 = vmul.f32 0.2, %v847_v60  ;;  %v916_v3 = vmax.f32 %v844_v54, %v900_v59 }
 0x2e4   :  { %v899_v2 = vmul.f32 0.2, %v839_v63  ;;  %v914_v6 = vmax.f32 %v836_v57, %v898_v62 }
 0x2e5   :  { %v917_v4 = vmax.f32 %v847_v60, %v901_v0 }
 0x2e6   :  { %v915_v7 = vmax.f32 %v839_v63, %v899_v2  ;;  %v2276_v8 = vpop.f32.mrb[20].mxu0 }
 0x2e7   :  { %v860_v9 = vadd.f32 %v2276_v8, %v706_v52  ;;  %v851_v10 = vpop.f32.mrb[21].mxu0  ;;  %v948_v11 = vpack.c.bf16 %v917_v4, %v916_v3  ;;  %v2436_v8 = vld [vmem:[%s2993_s2 + $0x98] sm:$0xff]  }
 0x2e8   :  { %v852_v12 = vadd.f32 %v851_v10, %v696_v50  ;;  %v2277_v13 = vpop.f32.mrb[22].mxu0  ;;  %v947_v14 = vpack.c.bf16 %v915_v7, %v914_v6  ;;  %v2434_v6 = vld [vmem:[%s2993_s2 + $0x88] sm:$0xff]   ;;  %v2435_v7 = vld [vmem:[%s2993_s2 + $0x90] sm:$0xff]  }
 0x2e9   :  { %v904_v15 = vmul.f32 0.2, %v860_v9  ;;  %v863_v16 = vadd.f32 %v2277_v13, %v711_v56  ;;  %v854_v17 = vpop.f32.mrb[23].mxu0  ;;  %v2438_v10 = vld [vmem:[%s2993_s2 + $0xa8] sm:$0xff]   ;;  %v2441_v13 = vld [vmem:[%s2993_s2 + $0xc0] sm:$0xff]  }
 0x2ea   :  { %v902_v19 = vmul.f32 0.2, %v852_v12  ;;  %v855_v20 = vadd.f32 %v854_v17, %v701_v51  ;;  %2286 = vmatprep.subr.bf16.mxu1 %v947_v14  ;;  %2334 = vmatprep.mubr.bf16.mxu0 %v2441_v13 }
 0x2eb   :  { %v905_v21 = vmul.f32 0.2, %v863_v16  ;;  %2287 = vmatpush3.bf16.msra.mxu1 %v947_v14  ;;  %v920_v24 = vmax.f32 %v860_v9, %v904_v15  ;;  %v2437_v9 = vld [vmem:[%s2993_s2 + $0xa0] sm:$0xff]   ;;  %v975_v14 = vpop.permute.xlu0 %974  ;;  %v980_v15 = vpop.permute.xlu1 %979 }
 0x2ec   :  { %v903_v23 = vmul.f32 0.2, %v855_v20  ;;  %2288 = vmatprep.subr.bf16.mxu1 %v948_v11  ;;  %v918_v26 = vmax.f32 %v852_v12, %v902_v19  ;;  %v2440_v12 = vld [vmem:[%s2993_s2 + $0xb8] sm:$0xff]  }
 0x2ed   :  { %v921_v25 = vmax.f32 %v863_v16, %v905_v21 }
 0x2ee   :  { %v919_v27 = vmax.f32 %v855_v20, %v903_v23  ;;  %v2280_v28 = vpop.f32.mrb[24].mxu0 }
 0x2ef   :  { %v876_v29 = vadd.f32 %v2280_v28, %v726_v18  ;;  %v867_v30 = vpop.f32.mrb[25].mxu0  ;;  %2289 = vmatpush3.bf16.msra.mxu1 %v948_v11  ;;  %v950_v31 = vpack.c.bf16 %v921_v25, %v920_v24  ;;  %v2439_v11 = vld [vmem:[%s2993_s2 + $0xb0] sm:$0xff]   ;;  %v985_v16 = vpop.permute.xlu0 %984 }
 0x2f0   :  { %v868_v33 = vadd.f32 %v867_v30, %v716_v1  ;;  %v2281_v34 = vpop.f32.mrb[26].mxu0  ;;  %v949_v35 = vpack.c.bf16 %v919_v27, %v918_v26  ;;  %v990_v17 = vpop.permute.xlu1 %989 }
 0x2f1   :  { %v908_v36 = vmul.f32 0.2, %v876_v29  ;;  %v879_v37 = vadd.f32 %v2281_v34, %v731_v22  ;;  %v870_v38 = vpop.f32.mrb[27].mxu0 }
 0x2f2   :  { %v906_v40 = vmul.f32 0.2, %v868_v33  ;;  %v871_v41 = vadd.f32 %v870_v38, %v721_v5  ;;  %2290 = vmatprep.subr.bf16.mxu1 %v949_v35 }
 0x2f3   :  { %v909_v42 = vmul.f32 0.2, %v879_v37  ;;  %2291 = vmatpush3.bf16.msra.mxu1 %v949_v35  ;;  %v924_v44 = vmax.f32 %v876_v29, %v908_v36  ;;  %v995_v18 = vpop.permute.xlu0 %994 }
 0x2f4   :  { %v907_v43 = vmul.f32 0.2, %v871_v41  ;;  %2292 = vmatprep.subr.bf16.mxu1 %v950_v31  ;;  %v922_v47 = vmax.f32 %v868_v33, %v906_v40  ;;  %v1000_v19 = vpop.permute.xlu1 %999 }
 0x2f5   :  { %v925_v45 = vmax.f32 %v879_v37, %v909_v42 }
 0x2f6   :  { %v923_v48 = vmax.f32 %v871_v41, %v907_v43  ;;  %v2284_v49 = vpop.f32.mrb[28].mxu0 }
 0x2f7   :  { %v892_v50 = vadd.f32 %v2284_v49, %v746_v46  ;;  %v883_v51 = vpop.f32.mrb[29].mxu0  ;;  %2293 = vmatpush3.bf16.msra.mxu1 %v950_v31  ;;  %v952_v52 = vpack.c.bf16 %v925_v45, %v924_v44  ;;  %v1005_v20 = vpop.permute.xlu0 %1004 }
 0x2f8   :  { %v884_v54 = vadd.f32 %v883_v51, %v736_v32  ;;  %v2285_v55 = vpop.f32.mrb[30].mxu0  ;;  %v951_v56 = vpack.c.bf16 %v923_v48, %v922_v47  ;;  %v1010_v24 = vpop.permute.xlu1 %1009 }
 0x2f9   :  { %v912_v57 = vmul.f32 0.2, %v892_v50  ;;  %v895_v58 = vadd.f32 %v2285_v55, %v751_v53  ;;  %v886_v59 = vpop.f32.mrb[31].mxu0 }
 0x2fa   :  { %v910_v60 = vmul.f32 0.2, %v884_v54  ;;  %v887_v61 = vadd.f32 %v886_v59, %v741_v39  ;;  %2294 = vmatprep.subr.bf16.mxu1 %v951_v56 }
 0x2fb   :  { %v913_v62 = vmul.f32 0.2, %v895_v58  ;;  %2295 = vmatpush3.bf16.msra.mxu1 %v951_v56  ;;  %v928_v0 = vmax.f32 %v892_v50, %v912_v57  ;;  %v1015_v33 = vpop.permute.xlu0 %1014 }
 0x2fc   :  { %v911_v63 = vmul.f32 0.2, %v887_v61  ;;  %2296 = vmatprep.subr.bf16.mxu1 %v952_v52  ;;  %v926_v2 = vmax.f32 %v884_v54, %v910_v60  ;;  %v1020_v37 = vpop.permute.xlu1 %1019 }
 0x2fd   :  { %v929_v1 = vmax.f32 %v895_v58, %v913_v62 }
 0x2fe   :  { %v927_v3 = vmax.f32 %v887_v61, %v911_v63 }
 0x2ff   :  { %2297 = vmatpush3.bf16.msra.mxu1 %v952_v52  ;;  %v954_v4 = vpack.c.bf16 %v929_v1, %v928_v0  ;;  %v1025_v50 = vpop.permute.xlu0 %1024 }
 0x300   :  { %v953_v5 = vpack.c.bf16 %v927_v3, %v926_v2  ;;  %v1030_v54 = vpop.permute.xlu1 %1029 }
 0x302   :  { %2298 = vmatprep.subr.bf16.mxu1 %v953_v5 }
 0x303   :  { %2299 = vmatpush3.bf16.msra.mxu1 %v953_v5  ;;  %v1035_v0 = vpop.permute.xlu0 %1034 }
 0x304   :  { %2300 = vmatprep.subr.bf16.mxu1 %v954_v4 }
 0x307   :  { %2301 = vmatpush3.bf16.msra.mxu1 %v954_v4 }
 0x30a   :  { %2303 = vmatmul.mubr.bf16.vlgmr.msra.gmra.mrb[16].mxu1 %v2434_v6 }
 0x30b   :  { %2306 = vmatprep.mubr.bf16.mxu1 %v2435_v7  ;;  %v1040_v7 = vpop.permute.xlu1 %1039 }
 0x312   :  { %2307 = vmatmul.mubr.bf16.gmra.mrb[20].mxu1 %v2436_v8 }
 0x313   :  { %2310 = vmatprep.mubr.bf16.mxu1 %v2437_v9 }
 0x31a   :  { %2311 = vmatmul.mubr.bf16.gmra.mrb[24].mxu1 %v2438_v10 }
 0x31b   :  { %2314 = vmatprep.mubr.bf16.mxu1 %v2439_v11 }
 0x322   :  { %2315 = vmatmul.mubr.bf16.gmra.mrb[28].mxu1 %v2440_v12 }
 0x3dd   :  { %v2304_v21 = vpop.f32.mrb[16].mxu1 }
 0x3de   :  { %v1143_v22 = vadd.f32 %v2304_v21, %v985_v16  ;;  %v1134_v23 = vpop.f32.mrb[17].mxu1  ;;  %v1050_v21 = vpop.permute.xlu1 %1049 }
 0x3df   :  { %v1135_v25 = vadd.f32 %v1134_v23, %v975_v14  ;;  %v2305_v26 = vpop.f32.mrb[18].mxu1  ;;  %v1045_v14 = vpop.permute.xlu0 %1044 }
 0x3e0   :  { %v1199_v27 = vmul.f32 0.2, %v1143_v22  ;;  %v1146_v28 = vadd.f32 %v2305_v26, %v990_v17  ;;  %v1137_v29 = vpop.f32.mrb[19].mxu1 }
 0x3e1   :  { %v1197_v30 = vmul.f32 0.2, %v1135_v25  ;;  %v1138_v31 = vadd.f32 %v1137_v29, %v980_v15 }
 0x3e2   :  { %v1200_v32 = vmul.f32 0.2, %v1146_v28  ;;  %v1215_v35 = vmax.f32 %v1143_v22, %v1199_v27 }
 0x3e3   :  { %v1198_v34 = vmul.f32 0.2, %v1138_v31  ;;  %v1213_v38 = vmax.f32 %v1135_v25, %v1197_v30 }
 0x3e4   :  { %v1216_v36 = vmax.f32 %v1146_v28, %v1200_v32 }
 0x3e5   :  { %v1214_v39 = vmax.f32 %v1138_v31, %v1198_v34  ;;  %v2308_v40 = vpop.f32.mrb[20].mxu1 }
 0x3e6   :  { %v1159_v41 = vadd.f32 %v2308_v40, %v1005_v20  ;;  %v1150_v42 = vpop.f32.mrb[21].mxu1  ;;  %v1247_v43 = vpack.c.bf16 %v1216_v36, %v1215_v35  ;;  %v2444_v40 = vld [vmem:[%s2993_s2 + $0xd8] sm:$0xff]  }
 0x3e7   :  { %v1151_v44 = vadd.f32 %v1150_v42, %v995_v18  ;;  %v2309_v45 = vpop.f32.mrb[22].mxu1  ;;  %v1246_v46 = vpack.c.bf16 %v1214_v39, %v1213_v38  ;;  %v2442_v38 = vld [vmem:[%s2993_s2 + $0xc8] sm:$0xff]   ;;  %v2443_v39 = vld [vmem:[%s2993_s2 + $0xd0] sm:$0xff]  }
 0x3e8   :  { %v1203_v47 = vmul.f32 0.2, %v1159_v41  ;;  %v1162_v48 = vadd.f32 %v2309_v45, %v1010_v24  ;;  %v1153_v49 = vpop.f32.mrb[23].mxu1  ;;  %v2446_v42 = vld [vmem:[%s2993_s2 + $0xe8] sm:$0xff]   ;;  %v2449_v45 = vld [vmem:[%s2993_s2 + $0x100] sm:$0xff]  }
 0x3e9   :  { %v1201_v51 = vmul.f32 0.2, %v1151_v44  ;;  %v1154_v52 = vadd.f32 %v1153_v49, %v1000_v19  ;;  %2318 = vmatprep.subr.bf16.mxu0 %v1246_v46  ;;  %2366 = vmatprep.mubr.bf16.mxu1 %v2449_v45 }
 0x3ea   :  { %v1204_v53 = vmul.f32 0.2, %v1162_v48  ;;  %2319 = vmatpush3.bf16.msra.mxu0 %v1246_v46  ;;  %v1219_v56 = vmax.f32 %v1159_v41, %v1203_v47  ;;  %v2445_v41 = vld [vmem:[%s2993_s2 + $0xe0] sm:$0xff]   ;;  %v1274_v46 = vpop.permute.xlu0 %1273  ;;  %v1279_v47 = vpop.permute.xlu1 %1278 }
 0x3eb   :  { %v1202_v55 = vmul.f32 0.2, %v1154_v52  ;;  %2320 = vmatprep.subr.bf16.mxu0 %v1247_v43  ;;  %v1217_v58 = vmax.f32 %v1151_v44, %v1201_v51  ;;  %v2448_v44 = vld [vmem:[%s2993_s2 + $0xf8] sm:$0xff]  }
 0x3ec   :  { %v1220_v57 = vmax.f32 %v1162_v48, %v1204_v53 }
 0x3ed   :  { %v1218_v59 = vmax.f32 %v1154_v52, %v1202_v55  ;;  %v2312_v60 = vpop.f32.mrb[24].mxu1 }
 0x3ee   :  { %v1175_v61 = vadd.f32 %v2312_v60, %v1025_v50  ;;  %v1166_v62 = vpop.f32.mrb[25].mxu1  ;;  %2321 = vmatpush3.bf16.msra.mxu0 %v1247_v43  ;;  %v1249_v63 = vpack.c.bf16 %v1220_v57, %v1219_v56  ;;  %v2447_v43 = vld [vmem:[%s2993_s2 + $0xf0] sm:$0xff]   ;;  %v1284_v48 = vpop.permute.xlu0 %1283 }
 0x3ef   :  { %v1167_v1 = vadd.f32 %v1166_v62, %v1015_v33  ;;  %v2313_v2 = vpop.f32.mrb[26].mxu1  ;;  %v1248_v3 = vpack.c.bf16 %v1218_v59, %v1217_v58  ;;  %v1289_v49 = vpop.permute.xlu1 %1288 }
 0x3f0   :  { %v1207_v4 = vmul.f32 0.2, %v1175_v61  ;;  %v1178_v5 = vadd.f32 %v2313_v2, %v1030_v54  ;;  %v1169_v6 = vpop.f32.mrb[27].mxu1 }
 0x3f1   :  { %v1205_v8 = vmul.f32 0.2, %v1167_v1  ;;  %v1170_v9 = vadd.f32 %v1169_v6, %v1020_v37  ;;  %2322 = vmatprep.subr.bf16.mxu0 %v1248_v3 }
 0x3f2   :  { %v1208_v10 = vmul.f32 0.2, %v1178_v5  ;;  %2323 = vmatpush3.bf16.msra.mxu0 %v1248_v3  ;;  %v1223_v12 = vmax.f32 %v1175_v61, %v1207_v4  ;;  %v1294_v50 = vpop.permute.xlu0 %1293 }
 0x3f3   :  { %v1206_v11 = vmul.f32 0.2, %v1170_v9  ;;  %2324 = vmatprep.subr.bf16.mxu0 %v1249_v63  ;;  %v1221_v15 = vmax.f32 %v1167_v1, %v1205_v8  ;;  %v1299_v51 = vpop.permute.xlu1 %1298 }
 0x3f4   :  { %v1224_v13 = vmax.f32 %v1178_v5, %v1208_v10 }
 0x3f5   :  { %v1222_v16 = vmax.f32 %v1170_v9, %v1206_v11  ;;  %v2316_v17 = vpop.f32.mrb[28].mxu1 }
 0x3f6   :  { %v1191_v18 = vadd.f32 %v2316_v17, %v1045_v14  ;;  %v1182_v19 = vpop.f32.mrb[29].mxu1  ;;  %2325 = vmatpush3.bf16.msra.mxu0 %v1249_v63  ;;  %v1251_v20 = vpack.c.bf16 %v1224_v13, %v1223_v12  ;;  %v1304_v52 = vpop.permute.xlu0 %1303 }
 0x3f7   :  { %v1183_v22 = vadd.f32 %v1182_v19, %v1035_v0  ;;  %v2317_v23 = vpop.f32.mrb[30].mxu1  ;;  %v1250_v24 = vpack.c.bf16 %v1222_v16, %v1221_v15  ;;  %v1309_v56 = vpop.permute.xlu1 %1308 }
 0x3f8   :  { %v1211_v25 = vmul.f32 0.2, %v1191_v18  ;;  %v1194_v26 = vadd.f32 %v2317_v23, %v1050_v21  ;;  %v1185_v27 = vpop.f32.mrb[31].mxu1 }
 0x3f9   :  { %v1209_v28 = vmul.f32 0.2, %v1183_v22  ;;  %v1186_v29 = vadd.f32 %v1185_v27, %v1040_v7  ;;  %2326 = vmatprep.subr.bf16.mxu0 %v1250_v24 }
 0x3fa   :  { %v1212_v30 = vmul.f32 0.2, %v1194_v26  ;;  %2327 = vmatpush3.bf16.msra.mxu0 %v1250_v24  ;;  %v1227_v32 = vmax.f32 %v1191_v18, %v1211_v25  ;;  %v1314_v1 = vpop.permute.xlu0 %1313 }
 0x3fb   :  { %v1210_v31 = vmul.f32 0.2, %v1186_v29  ;;  %2328 = vmatprep.subr.bf16.mxu0 %v1251_v20  ;;  %v1225_v34 = vmax.f32 %v1183_v22, %v1209_v28  ;;  %v1319_v5 = vpop.permute.xlu1 %1318 }
 0x3fc   :  { %v1228_v33 = vmax.f32 %v1194_v26, %v1212_v30 }
 0x3fd   :  { %v1226_v35 = vmax.f32 %v1186_v29, %v1210_v31 }
 0x3fe   :  { %2329 = vmatpush3.bf16.msra.mxu0 %v1251_v20  ;;  %v1253_v36 = vpack.c.bf16 %v1228_v33, %v1227_v32  ;;  %v1324_v18 = vpop.permute.xlu0 %1323 }
 0x3ff   :  { %v1252_v37 = vpack.c.bf16 %v1226_v35, %v1225_v34  ;;  %v1329_v22 = vpop.permute.xlu1 %1328 }
 0x401   :  { %2330 = vmatprep.subr.bf16.mxu0 %v1252_v37 }
 0x402   :  { %2331 = vmatpush3.bf16.msra.mxu0 %v1252_v37  ;;  %v1334_v32 = vpop.permute.xlu0 %1333 }
 0x403   :  { %2332 = vmatprep.subr.bf16.mxu0 %v1253_v36 }
 0x406   :  { %2333 = vmatpush3.bf16.msra.mxu0 %v1253_v36 }
 0x409   :  { %2335 = vmatmul.mubr.bf16.vlgmr.msra.gmra.mrb[32].mxu0 %v2442_v38 }
 0x40a   :  { %2338 = vmatprep.mubr.bf16.mxu0 %v2443_v39  ;;  %v1339_v39 = vpop.permute.xlu1 %1338 }
 0x411   :  { %2339 = vmatmul.mubr.bf16.gmra.mrb[36].mxu0 %v2444_v40 }
 0x412   :  { %2342 = vmatprep.mubr.bf16.mxu0 %v2445_v41 }
 0x419   :  { %2343 = vmatmul.mubr.bf16.gmra.mrb[40].mxu0 %v2446_v42 }
 0x41a   :  { %2346 = vmatprep.mubr.bf16.mxu0 %v2447_v43 }
 0x421   :  { %2347 = vmatmul.mubr.bf16.gmra.mrb[44].mxu0 %v2448_v44 }
 0x4dc   :  { %v2336_v53 = vpop.f32.mrb[32].mxu0 }
 0x4dd   :  { %v1442_v54 = vadd.f32 %v2336_v53, %v1284_v48  ;;  %v1433_v55 = vpop.f32.mrb[33].mxu0  ;;  %v1349_v53 = vpop.permute.xlu1 %1348 }
 0x4de   :  { %v1434_v57 = vadd.f32 %v1433_v55, %v1274_v46  ;;  %v2337_v58 = vpop.f32.mrb[34].mxu0  ;;  %v1344_v46 = vpop.permute.xlu0 %1343 }
 0x4df   :  { %v1498_v59 = vmul.f32 0.2, %v1442_v54  ;;  %v1445_v60 = vadd.f32 %v2337_v58, %v1289_v49  ;;  %v1436_v61 = vpop.f32.mrb[35].mxu0 }
 0x4e0   :  { %v1496_v62 = vmul.f32 0.2, %v1434_v57  ;;  %v1437_v63 = vadd.f32 %v1436_v61, %v1279_v47 }
 0x4e1   :  { %v1499_v0 = vmul.f32 0.2, %v1445_v60  ;;  %v1514_v3 = vmax.f32 %v1442_v54, %v1498_v59 }
 0x4e2   :  { %v1497_v2 = vmul.f32 0.2, %v1437_v63  ;;  %v1512_v6 = vmax.f32 %v1434_v57, %v1496_v62 }
 0x4e3   :  { %v1515_v4 = vmax.f32 %v1445_v60, %v1499_v0 }
 0x4e4   :  { %v1513_v7 = vmax.f32 %v1437_v63, %v1497_v2  ;;  %v2340_v8 = vpop.f32.mrb[36].mxu0 }
 0x4e5   :  { %v1458_v9 = vadd.f32 %v2340_v8, %v1304_v52  ;;  %v1449_v10 = vpop.f32.mrb[37].mxu0  ;;  %v1546_v11 = vpack.c.bf16 %v1515_v4, %v1514_v3  ;;  %v2452_v8 = vld [vmem:[%s2993_s2 + $0x118] sm:$0xff]  }
 0x4e6   :  { %v1450_v12 = vadd.f32 %v1449_v10, %v1294_v50  ;;  %v2341_v13 = vpop.f32.mrb[38].mxu0  ;;  %v1545_v14 = vpack.c.bf16 %v1513_v7, %v1512_v6  ;;  %v2450_v6 = vld [vmem:[%s2993_s2 + $0x108] sm:$0xff]   ;;  %v2451_v7 = vld [vmem:[%s2993_s2 + $0x110] sm:$0xff]  }
 0x4e7   :  { %v1502_v15 = vmul.f32 0.2, %v1458_v9  ;;  %v1461_v16 = vadd.f32 %v2341_v13, %v1309_v56  ;;  %v1452_v17 = vpop.f32.mrb[39].mxu0  ;;  %v2454_v10 = vld [vmem:[%s2993_s2 + $0x128] sm:$0xff]   ;;  %v2486_v13 = vmov 0.0  }
 0x4e8   :  { %v1500_v19 = vmul.f32 0.2, %v1450_v12  ;;  %v1453_v20 = vadd.f32 %v1452_v17, %v1299_v51  ;;  %2350 = vmatprep.subr.bf16.mxu1 %v1545_v14  ;;  %2382 = vmatprep.subr.bf16.mxu0 %v2486_v13 }
 0x4e9   :  { %v1503_v21 = vmul.f32 0.2, %v1461_v16  ;;  %2351 = vmatpush3.bf16.msra.mxu1 %v1545_v14  ;;  %v1518_v24 = vmax.f32 %v1458_v9, %v1502_v15  ;;  %v2453_v9 = vld [vmem:[%s2993_s2 + $0x120] sm:$0xff]   ;;  %2398 = vmatprep.mubr.msk.bf16.mxu0 %vm2487_vm1, %v2486_v13  ;;  %v1573_v14 = vpop.permute.xlu0 %1572  ;;  %v1578_v15 = vpop.permute.xlu1 %1577 }
 0x4ea   :  { %v1501_v23 = vmul.f32 0.2, %v1453_v20  ;;  %2352 = vmatprep.subr.bf16.mxu1 %v1546_v11  ;;  %v1516_v26 = vmax.f32 %v1450_v12, %v1500_v19  ;;  %v2456_v12 = vld [vmem:[%s2993_s2 + $0x138] sm:$0xff]  }
 0x4eb   :  { %v1519_v25 = vmax.f32 %v1461_v16, %v1503_v21 }
 0x4ec   :  { %v1517_v27 = vmax.f32 %v1453_v20, %v1501_v23  ;;  %v2344_v28 = vpop.f32.mrb[40].mxu0 }
 0x4ed   :  { %v1474_v29 = vadd.f32 %v2344_v28, %v1324_v18  ;;  %v1465_v30 = vpop.f32.mrb[41].mxu0  ;;  %2353 = vmatpush3.bf16.msra.mxu1 %v1546_v11  ;;  %v1548_v31 = vpack.c.bf16 %v1519_v25, %v1518_v24  ;;  %v2455_v11 = vld [vmem:[%s2993_s2 + $0x130] sm:$0xff]   ;;  %v1583_v16 = vpop.permute.xlu0 %1582 }
 0x4ee   :  { %v1466_v33 = vadd.f32 %v1465_v30, %v1314_v1  ;;  %v2345_v34 = vpop.f32.mrb[42].mxu0  ;;  %v1547_v35 = vpack.c.bf16 %v1517_v27, %v1516_v26  ;;  %v1588_v17 = vpop.permute.xlu1 %1587 }
 0x4ef   :  { %v1506_v36 = vmul.f32 0.2, %v1474_v29  ;;  %v1477_v37 = vadd.f32 %v2345_v34, %v1329_v22  ;;  %v1468_v38 = vpop.f32.mrb[43].mxu0 }
 0x4f0   :  { %v1504_v40 = vmul.f32 0.2, %v1466_v33  ;;  %v1469_v41 = vadd.f32 %v1468_v38, %v1319_v5  ;;  %2354 = vmatprep.subr.bf16.mxu1 %v1547_v35 }
 0x4f1   :  { %v1507_v42 = vmul.f32 0.2, %v1477_v37  ;;  %2355 = vmatpush3.bf16.msra.mxu1 %v1547_v35  ;;  %v1522_v44 = vmax.f32 %v1474_v29, %v1506_v36  ;;  %v1593_v18 = vpop.permute.xlu0 %1592 }
 0x4f2   :  { %v1505_v43 = vmul.f32 0.2, %v1469_v41  ;;  %2356 = vmatprep.subr.bf16.mxu1 %v1548_v31  ;;  %v1520_v47 = vmax.f32 %v1466_v33, %v1504_v40  ;;  %v1598_v19 = vpop.permute.xlu1 %1597 }
 0x4f3   :  { %v1523_v45 = vmax.f32 %v1477_v37, %v1507_v42 }
 0x4f4   :  { %v1521_v48 = vmax.f32 %v1469_v41, %v1505_v43  ;;  %v2348_v49 = vpop.f32.mrb[44].mxu0 }
 0x4f5   :  { %v1490_v50 = vadd.f32 %v2348_v49, %v1344_v46  ;;  %v1481_v51 = vpop.f32.mrb[45].mxu0  ;;  %2357 = vmatpush3.bf16.msra.mxu1 %v1548_v31  ;;  %v1550_v52 = vpack.c.bf16 %v1523_v45, %v1522_v44  ;;  %v1603_v20 = vpop.permute.xlu0 %1602 }
 0x4f6   :  { %v1482_v54 = vadd.f32 %v1481_v51, %v1334_v32  ;;  %v2349_v55 = vpop.f32.mrb[46].mxu0  ;;  %v1549_v56 = vpack.c.bf16 %v1521_v48, %v1520_v47  ;;  %v1608_v24 = vpop.permute.xlu1 %1607 }
 0x4f7   :  { %v1510_v57 = vmul.f32 0.2, %v1490_v50  ;;  %v1493_v58 = vadd.f32 %v2349_v55, %v1349_v53  ;;  %v1484_v59 = vpop.f32.mrb[47].mxu0 }
 0x4f8   :  { %v1508_v60 = vmul.f32 0.2, %v1482_v54  ;;  %v1485_v61 = vadd.f32 %v1484_v59, %v1339_v39  ;;  %2358 = vmatprep.subr.bf16.mxu1 %v1549_v56 }
 0x4f9   :  { %v1511_v62 = vmul.f32 0.2, %v1493_v58  ;;  %2359 = vmatpush3.bf16.msra.mxu1 %v1549_v56  ;;  %v1526_v0 = vmax.f32 %v1490_v50, %v1510_v57  ;;  %v1613_v33 = vpop.permute.xlu0 %1612 }
 0x4fa   :  { %v1509_v63 = vmul.f32 0.2, %v1485_v61  ;;  %2360 = vmatprep.subr.bf16.mxu1 %v1550_v52  ;;  %v1524_v2 = vmax.f32 %v1482_v54, %v1508_v60  ;;  %v1618_v37 = vpop.permute.xlu1 %1617 }
 0x4fb   :  { %v1527_v1 = vmax.f32 %v1493_v58, %v1511_v62 }
 0x4fc   :  { %v1525_v3 = vmax.f32 %v1485_v61, %v1509_v63 }
 0x4fd   :  { %2361 = vmatpush3.bf16.msra.mxu1 %v1550_v52  ;;  %v1552_v4 = vpack.c.bf16 %v1527_v1, %v1526_v0  ;;  %v1623_v50 = vpop.permute.xlu0 %1622 }
 0x4fe   :  { %v1551_v5 = vpack.c.bf16 %v1525_v3, %v1524_v2  ;;  %v1628_v54 = vpop.permute.xlu1 %1627 }
 0x500   :  { %2362 = vmatprep.subr.bf16.mxu1 %v1551_v5 }
 0x501   :  { %2363 = vmatpush3.bf16.msra.mxu1 %v1551_v5  ;;  %v1633_v0 = vpop.permute.xlu0 %1632 }
 0x502   :  { %2364 = vmatprep.subr.bf16.mxu1 %v1552_v4 }
 0x505   :  { %2365 = vmatpush3.bf16.msra.mxu1 %v1552_v4 }
 0x508   :  { %2367 = vmatmul.mubr.bf16.vlgmr.msra.gmra.mrb[32].mxu1 %v2450_v6 }
 0x509   :  { %2370 = vmatprep.mubr.bf16.mxu1 %v2451_v7  ;;  %v1638_v7 = vpop.permute.xlu1 %1637 }
 0x510   :  { %2371 = vmatmul.mubr.bf16.gmra.mrb[36].mxu1 %v2452_v8 }
 0x511   :  { %2374 = vmatprep.mubr.bf16.mxu1 %v2453_v9 }
 0x518   :  { %2375 = vmatmul.mubr.bf16.gmra.mrb[40].mxu1 %v2454_v10 }
 0x519   :  { %2378 = vmatprep.mubr.bf16.mxu1 %v2455_v11 }
 0x520   :  { %2379 = vmatmul.mubr.bf16.gmra.mrb[44].mxu1 %v2456_v12 }
 0x5db   :  { %v2368_v21 = vpop.f32.mrb[32].mxu1 }
 0x5dc   :  { %v1741_v22 = vadd.f32 %v2368_v21, %v1583_v16  ;;  %v1732_v23 = vpop.f32.mrb[33].mxu1 }
 0x5dd   :  { %v1733_v25 = vadd.f32 %v1732_v23, %v1573_v14  ;;  %v2369_v26 = vpop.f32.mrb[34].mxu1 }
 0x5de   :  { %v1797_v27 = vmul.f32 0.2, %v1741_v22  ;;  %v1744_v28 = vadd.f32 %v2369_v26, %v1588_v17  ;;  %v1735_v29 = vpop.f32.mrb[35].mxu1 }
 0x5df   :  { %v1795_v30 = vmul.f32 0.2, %v1733_v25  ;;  %v1736_v31 = vadd.f32 %v1735_v29, %v1578_v15  ;;  %v1643_v15 = vpop.permute.xlu0 %1642 }
 0x5e0   :  { %v1798_v32 = vmul.f32 0.2, %v1744_v28  ;;  %v1813_v35 = vmax.f32 %v1741_v22, %v1797_v27  ;;  %v1648_v22 = vpop.permute.xlu1 %1647 }
 0x5e1   :  { %v1796_v34 = vmul.f32 0.2, %v1736_v31  ;;  %v1811_v38 = vmax.f32 %v1733_v25, %v1795_v30 }
 0x5e2   :  { %v1814_v36 = vmax.f32 %v1744_v28, %v1798_v32 }
 0x5e3   :  { %v1812_v39 = vmax.f32 %v1736_v31, %v1796_v34  ;;  %v2372_v40 = vpop.f32.mrb[36].mxu1 }
 0x5e4   :  { %v1829_v41 = vpack.c.bf16 %v1814_v36, %v1813_v35  ;;  %v1757_v42 = vadd.f32 %v2372_v40, %v1603_v20  ;;  %v1748_v43 = vpop.f32.mrb[37].mxu1  ;;  %v1881_v40 = vpop.permute.xlu0 %1880 }
 0x5e5   :  { %v1828_v44 = vpack.c.bf16 %v1812_v39, %v1811_v38  ;;  %v1749_v45 = vadd.f32 %v1748_v43, %v1593_v18  ;;  %v2373_v46 = vpop.f32.mrb[38].mxu1  ;;  %v1827_v39 = vld [vmem:[%s2994_s3] sm:$0xf]  ;;  %s2461_s3 = scalar_lea.vmem %s1898_s14, 16 }
 0x5e6   :  { %v1801_v47 = vmul.f32 0.2, %v1757_v42  ;;  %v1760_v48 = vadd.f32 %v2373_v46, %v1608_v24  ;;  %v1751_v49 = vpop.f32.mrb[39].mxu1  ;;  %p2462_p0 = scmp.ne.s32.totalorder %s1898_s14, %s2461_s3  ;;  %p2467_p2 = scmp.lt.s32.totalorder %s2465_s15, %s2461_s3 }
 0x5e7   :  { %v1799_v51 = vmul.f32 0.2, %v1749_v45  ;;  %v1752_v52 = vadd.f32 %v1751_v49, %v1598_v19  ;;  %2383 = vmatpush3.bf16.msra.mxu0 %v1828_v44 }
 0x5e8   :  { %v1802_v53 = vmul.f32 0.2, %v1760_v48  ;;  %2384 = vmatprep.subr.bf16.mxu0 %v2486_v13  ;;  %v1817_v56 = vmax.f32 %v1757_v42, %v1801_v47  ;;  %p2468_p3 = por %p2467_p2, %p2466_p1 }
 0x5e9   :  { %v1800_v55 = vmul.f32 0.2, %v1752_v52  ;;  %v1815_v58 = vmax.f32 %v1749_v45, %v1799_v51 }
 0x5ea   :  { %v1818_v57 = vmax.f32 %v1760_v48, %v1802_v53  ;;  %p2469_p4 = pnand %p2468_p3, %p2462_p0 }
 0x5eb   :  { %v1816_v59 = vmax.f32 %v1752_v52, %v1800_v55  ;;  %v2376_v60 = vpop.f32.mrb[40].mxu1  ;;  %2385 = vmatpush3.bf16.msra.mxu0 %v1829_v41 }
 0x5ec   :  { %v1831_v61 = vpack.c.bf16 %v1818_v57, %v1817_v56  ;;  %v1773_v62 = vadd.f32 %v2376_v60, %v1623_v50  ;;  %v1764_v63 = vpop.f32.mrb[41].mxu1  ;;  %2386 = vmatprep.subr.bf16.mxu0 %v2486_v13 }
 0x5ed   :  { %v1830_v1 = vpack.c.bf16 %v1816_v59, %v1815_v58  ;;  %v1765_v2 = vadd.f32 %v1764_v63, %v1613_v33  ;;  %v2377_v3 = vpop.f32.mrb[42].mxu1 }
 0x5ee   :  { %v1805_v4 = vmul.f32 0.2, %v1773_v62  ;;  %v1776_v5 = vadd.f32 %v2377_v3, %v1628_v54  ;;  %v1767_v6 = vpop.f32.mrb[43].mxu1 }
 0x5ef   :  { %v1803_v8 = vmul.f32 0.2, %v1765_v2  ;;  %v1768_v9 = vadd.f32 %v1767_v6, %v1618_v37  ;;  %2387 = vmatpush3.bf16.msra.mxu0 %v1830_v1 }
 0x5f0   :  { %v1806_v10 = vmul.f32 0.2, %v1776_v5  ;;  %2388 = vmatprep.subr.bf16.mxu0 %v2486_v13  ;;  %v1821_v12 = vmax.f32 %v1773_v62, %v1805_v4 }
 0x5f1   :  { %v1804_v11 = vmul.f32 0.2, %v1768_v9  ;;  %v1819_v16 = vmax.f32 %v1765_v2, %v1803_v8 }
 0x5f2   :  { %v1822_v14 = vmax.f32 %v1776_v5, %v1806_v10 }
 0x5f3   :  { %v1820_v17 = vmax.f32 %v1768_v9, %v1804_v11  ;;  %v2380_v18 = vpop.f32.mrb[44].mxu1  ;;  %2389 = vmatpush3.bf16.msra.mxu0 %v1831_v61 }
 0x5f4   :  { %v1833_v19 = vpack.c.bf16 %v1822_v14, %v1821_v12  ;;  %v1789_v20 = vadd.f32 %v2380_v18, %v1643_v15  ;;  %v1780_v21 = vpop.f32.mrb[45].mxu1  ;;  %2390 = vmatprep.subr.bf16.mxu0 %v2486_v13 }
 0x5f5   :  { %v1832_v23 = vpack.c.bf16 %v1820_v17, %v1819_v16  ;;  %v1781_v24 = vadd.f32 %v1780_v21, %v1633_v0  ;;  %v2381_v25 = vpop.f32.mrb[46].mxu1 }
 0x5f6   :  { %v1809_v26 = vmul.f32 0.2, %v1789_v20  ;;  %v1792_v27 = vadd.f32 %v2381_v25, %v1648_v22  ;;  %v1783_v28 = vpop.f32.mrb[47].mxu1 }
 0x5f7   :  { %v1807_v29 = vmul.f32 0.2, %v1781_v24  ;;  %v1784_v30 = vadd.f32 %v1783_v28, %v1638_v7  ;;  %2391 = vmatpush3.bf16.msra.mxu0 %v1832_v23 }
 0x5f8   :  { %v1810_v31 = vmul.f32 0.2, %v1792_v27  ;;  %2392 = vmatprep.subr.bf16.mxu0 %v2486_v13  ;;  %v1825_v33 = vmax.f32 %v1789_v20, %v1809_v26 }
 0x5f9   :  { %v1808_v32 = vmul.f32 0.2, %v1784_v30  ;;  %v1823_v35 = vmax.f32 %v1781_v24, %v1807_v29 }
 0x5fa   :  { %v1826_v34 = vmax.f32 %v1792_v27, %v1810_v31 }
 0x5fb   :  { %v1824_v36 = vmax.f32 %v1784_v30, %v1808_v32  ;;  %2393 = vmatpush3.bf16.msra.mxu0 %v1833_v19 }
 0x5fc   :  { %v1835_v37 = vpack.c.bf16 %v1826_v34, %v1825_v33  ;;  %2394 = vmatprep.subr.bf16.mxu0 %v2486_v13 }
 0x5fd   :  { %v1834_v38 = vpack.c.bf16 %v1824_v36, %v1823_v35 }
 0x5ff   :  { %2395 = vmatpush3.bf16.msra.mxu0 %v1834_v38 }
 0x600   :  { %2396 = vmatprep.subr.bf16.mxu0 %v2486_v13 }
 0x603   :  { %2397 = vmatpush3.bf16.msra.mxu0 %v1835_v37 }
 0x606   :  { %2399 = vmatmul.mubr.bf16.vlgmr.msra.gmra.mrb[48].mxu0 %v1827_v39 }
 0x6d9   :  { %v1870_v41 = vpop.f32.mrb[48].mxu0 }
 0x6da   :  { %v1883_v42 = vadd.f32 %v1881_v40, %v1870_v41  ;;  %v2400_v43 = vpop.f32.mrb[49].mxu0 }
 0x6db   :  { %v1873_v44 = vpop.f32.mrb[50].mxu0 }
 0x6dc   :  { %v1884_v45 = vsub.f32 0.0, %v1883_v42  ;;  %v2401_v46 = vpop.f32.mrb[51].mxu0 }
 0x6de   :  { %v1885_v47 = vmul.f32 1.442695, %v1884_v45 }
 0x6e0   :  { %2457 = vpow2.f32 %v1885_v47 }
 0x6ea   :  { %v2458_v48 = vpop.eup %2457 }
 0x6eb   :  { %v1887_v49 = vadd.f32 1.0, %v2458_v48 }
 0x6ed   :  { %2459 = vrcp.f32 %v1887_v49 }
 0x6f7   :  { %v2460_v13 = vpop.eup %2459 }
 0x6f8   :  { %1890 = vst.msk [vmem:[#allocation2] sm:$0x1] %vm1889_vm2, %v2460_v13 }
 0x6f9   :  { %2472 = shalt.err (!%p2469_p4)
}
 0x6fa   :  { %s2473_s4 = scalar_lea.hbm %s2996_s5, 16 }
 0x6fb   :  { %p2474_p5 = scmp.ne.s32.totalorder %s2996_s5, %s2473_s4  ;;  %p2477_p6 = scmp.lt.u32.totalorder %s2473_s4, %s2996_s5 }
 0x6fd   :  { %p2479_p7 = pnand %p2477_p6, %p2474_p5 }
 0x6ff   :  { %2482 = shalt.err (!%p2479_p7)
}
 0x700   :  { %1900 = dma.vmem_to_hbm [thread:$0]  %s1898_s14, 16, %s2996_s5, [#allocation3]  }
 0x701   :  { %2483 = dma.done.wait [#allocation3], 16  }
 0x702   :  { %2484 = vsyncadd [#allocation3], 4294967280 }
 0x703   :  { %1904 = vsyncpa [#allocation3], 1 }

</bundles_post_ra>
